<compile_context>
chip_gen: v7x
topology: tpu7x:2x2x1
jax: 0.10.0
libtpu: 0.0.40
codegen_flags: <defaults>
</compile_context>

<pallas_src>
import functools

import jax
import jax.numpy as jnp
import numpy as np
from jax import lax
from jax.experimental import pallas as pl
from jax.experimental.pallas import tpu as pltpu

ODE_UNFOLDS = 6
EPSILON = 1e-8
ELAPSED_TIME = 1.0


def _softplus(x):
    # numerically-stable softplus (matches torch.nn.Softplus for this range)
    return jnp.maximum(x, 0.0) + jnp.log1p(jnp.exp(-jnp.abs(x)))


def ltc_kernel(
    tb, tc,        # python ints: batch rows / timesteps handled per grid step
    # inputs
    x_ref,         # (tb, tc, S) current time-chunk slice
    h0_ref,        # (tb, U) initial hidden state (this batch tile)
    vec_u_ref,     # (5, U): cm_t, num_offset, den_offset, output_w, output_b
    vec_s_ref,     # (2, S): input_w, input_b
    mats_u_ref,    # (4, U, U): 0.5*sigma, mu, 0.5*softplus(w)*mask, ...*erev
    mats_s_ref,    # (4, S, U): sensory equivalents
    # outputs
    out_seq_ref,   # (tb, tc, U)
    h_out_ref,     # (tb, U)
    # scratch (persist across grid steps)
    v_scr,         # (tb, U)      hidden-state carry across time chunks
    wnum_scr,      # (tb, tc, U)  sensory numerator contribution, whole chunk
    wden_scr,      # (tb, tc, U)  sensory denominator contribution, whole chunk
):
    S = x_ref.shape[-1]
    U = h0_ref.shape[-1]
    t = pl.program_id(1)

    @pl.when(t == 0)
    def _init():
        # Reset the hidden-state carry for this batch tile.
        v_scr[...] = h0_ref[...]

    # ---- loop-invariant parameter views (all folds done in the wrapper) ----
    sigma_h = mats_u_ref[0][None]        # (1, U, U)  0.5 * sigma
    mu = mats_u_ref[1][None]             # (1, U, U)
    hw_eff = mats_u_ref[2][None]         # (1, U, U)  0.5 * softplus(w) * mask
    hw_erev = mats_u_ref[3][None]        # (1, U, U)  ... * erev

    cm_t = vec_u_ref[0, :]               # (U,)
    num_off = vec_u_ref[1, :]            # (U,) gleak*vleak + 0.5*colsum terms
    den_off = vec_u_ref[2, :]            # (U,) cm_t+gleak+eps + 0.5*colsum terms
    out_w = vec_u_ref[3, :]              # (U,)
    out_b = vec_u_ref[4, :]              # (U,)
    in_w = vec_s_ref[0, :]               # (S,)
    in_b = vec_s_ref[1, :]               # (S,)

    s_sigma_h = mats_s_ref[0]            # (S, U)  0.5 * sensory_sigma
    s_mu = mats_s_ref[1]                 # (S, U)
    hsw_eff = mats_s_ref[2]              # (S, U)  0.5 * softplus(sensory_w)*mask
    hsw_erev = mats_s_ref[3]             # (S, U)  ... * sensory_erev

    # ---- sensory pass for the whole time chunk, hoisted out of the recurrence.
    # Static loop over the S pre-synaptic inputs keeps everything rank-3 with a
    # full (tc, U) vector footprint and turns the reduce-over-S into VPU adds.
    x_aff = x_ref[...] * in_w + in_b                         # (tb, tc, S)
    wn = jnp.zeros((tb, tc, U), jnp.float32)
    wd = jnp.zeros((tb, tc, U), jnp.float32)
    for s in range(S):
        th_s = jnp.tanh((x_aff[:, :, s:s + 1] - s_mu[s]) * s_sigma_h[s])  # (tb,tc,U)
        wn = wn + hsw_erev[s] * th_s
        wd = wd + hsw_eff[s] * th_s
    wnum_scr[...] = wn
    wden_scr[...] = wd

    # ---- time recurrence (rolled); only the 6 ODE unfolds are unrolled. ----
    def time_step(i, v):
        num_c = wnum_scr[:, pl.ds(i, 1), :][:, 0, :] + num_off   # (tb, U)
        den_c = wden_scr[:, pl.ds(i, 1), :][:, 0, :] + den_off   # (tb, U)

        def ode_unfold(_, v_pre):
            # sigmoid(sigma*(v-mu)) == 0.5*tanh(0.5*sigma*(v-mu)) + 0.5;
            # the 0.5s / +0.5 column sums are pre-folded into hw_*, num_c, den_c.
            th = jnp.tanh((v_pre[:, :, None] - mu) * sigma_h)    # (tb, U, U)
            numerator = cm_t * v_pre + jnp.sum(hw_erev * th, axis=1) + num_c
            denominator = jnp.sum(hw_eff * th, axis=1) + den_c
            # Exact divide kept so the 1e-4 reference check holds.
            return numerator / denominator

        v_new = lax.fori_loop(0, ODE_UNFOLDS, ode_unfold, v, unroll=True)
        # output mapping (affine); motor_size == state_size, no slicing
        out_seq_ref[:, pl.ds(i, 1), :] = (v_new * out_w + out_b)[:, None, :]
        return v_new

    v_final = lax.fori_loop(0, tc, time_step, v_scr[...])
    v_scr[...] = v_final
    # Unconditional write is free insurance: HBM writeback of this block only
    # happens when the batch block index changes, i.e. after the last chunk.
    h_out_ref[...] = v_final


def ltc_forward(x, h0, params, *, time_chunk=None, batch_tile=None):
    """x: (B, L, S) float32, h0: (B, U) float32, params: dict of arrays.

    time_chunk: timesteps per grid step (default: 64 if L is a longer multiple
                of 64, else the whole sequence).
    batch_tile: batch rows per grid step (default: whole batch). Set smaller
                (a divisor of B, ideally a multiple of 8) on v7x to shard the
                "parallel" batch axis across its 2 TensorCores.
    """
    B, L, S = x.shape
    U = h0.shape[1]
    if time_chunk is not None:
        tc = time_chunk
    elif L > 64 and L % 64 == 0:
        tc = 64
    else:
        tc = L
    tb = B if batch_tile is None else batch_tile
    assert L % tc == 0 and B % tb == 0
    nb, nt = B // tb, L // tc
    dt = jnp.float32

    # ---- fold all time-invariant parameter transforms once, in the wrapper ----
    gleak = _softplus(params["gleak"])
    cm_t = _softplus(params["cm"]) / (ELAPSED_TIME / ODE_UNFOLDS)
    w_eff = _softplus(params["w"]) * params["sparsity_mask"]
    sw_eff = _softplus(params["sensory_w"]) * params["sensory_sparsity_mask"]
    # tanh reparameterization of the sigmoid gates: halve the synapse weights /
    # sigmas and fold the "+0.5" column sums into per-unit offsets.
    hw_eff = 0.5 * w_eff
    hw_erev = hw_eff * params["erev"]
    hsw_eff = 0.5 * sw_eff
    hsw_erev = hsw_eff * params["sensory_erev"]
    num_off = (gleak * params["vleak"]
               + jnp.sum(hw_erev, axis=0) + jnp.sum(hsw_erev, axis=0))
    den_off = (cm_t + gleak + EPSILON
               + jnp.sum(hw_eff, axis=0) + jnp.sum(hsw_eff, axis=0))

    vec_u = jnp.stack([cm_t, num_off, den_off,
                       params["output_w"], params["output_b"]]).astype(dt)   # (5, U)
    vec_s = jnp.stack([params["input_w"], params["input_b"]]).astype(dt)     # (2, S)
    mats_u = jnp.stack([0.5 * params["sigma"], params["mu"],
                        hw_eff, hw_erev]).astype(dt)                         # (4, U, U)
    mats_s = jnp.stack([0.5 * params["sensory_sigma"], params["sensory_mu"],
                        hsw_eff, hsw_erev]).astype(dt)                       # (4, S, U)

    in_specs = [
        pl.BlockSpec((tb, tc, S), lambda b, t: (b, t, 0)),   # x time chunk
        pl.BlockSpec((tb, U), lambda b, t: (b, 0)),          # h0
        pl.BlockSpec((5, U), lambda b, t: (0, 0)),           # packed U-vectors
        pl.BlockSpec((2, S), lambda b, t: (0, 0)),           # packed S-vectors
        pl.BlockSpec((4, U, U), lambda b, t: (0, 0, 0)),     # recurrent mats
        pl.BlockSpec((4, S, U), lambda b, t: (0, 0, 0)),     # sensory mats
    ]
    out_specs = [
        pl.BlockSpec((tb, tc, U), lambda b, t: (b, t, 0)),   # output sequence
        pl.BlockSpec((tb, U), lambda b, t: (b, 0)),          # final hidden state
    ]

    f = pl.pallas_call(
        functools.partial(ltc_kernel, tb, tc),
        out_shape=(
            jax.ShapeDtypeStruct((B, L, U), dt),
            jax.ShapeDtypeStruct((B, U), dt),
        ),
        grid_spec=pltpu.PrefetchScalarGridSpec(
            num_scalar_prefetch=0,
            grid=(nb, nt),
            in_specs=in_specs,
            out_specs=out_specs,
            scratch_shapes=[
                pltpu.VMEM((tb, U), jnp.float32),        # v carry across chunks
                pltpu.VMEM((tb, tc, U), jnp.float32),    # sensory numerator chunk
                pltpu.VMEM((tb, tc, U), jnp.float32),    # sensory denominator chunk
            ],
        ),
        compiler_params=pltpu.CompilerParams(
            # batch tiles are independent (megacore-shardable); the time
            # recurrence is sequential and must stay the fastest grid axis.
            dimension_semantics=("parallel", "arbitrary"),
            vmem_limit_bytes=32 * 1024 * 1024,
        ),
    )
    return f(x.astype(dt), h0.astype(dt), vec_u, vec_s, mats_u, mats_s)


def ltc_reference(x, h0, params):
    """Pure-JAX reference mirroring LTCCell._ode_solver / LTC.forward."""
    B, L, S = x.shape
    gleak = _softplus(params["gleak"])
    vleak = params["vleak"]
    cm_t = _softplus(params["cm"]) / (ELAPSED_TIME / ODE_UNFOLDS)
    w_param = _softplus(params["w"])
    sw = _softplus(params["sensory_w"])

    outs = []
    v = h0
    for t in range(L):
        xt = x[:, t, :] * params["input_w"] + params["input_b"]
        s_act = sw[None] * jax.nn.sigmoid(
            (xt[:, :, None] - params["sensory_mu"][None]) * params["sensory_sigma"][None])
        s_act = s_act * params["sensory_sparsity_mask"][None]
        wns = jnp.sum(s_act * params["sensory_erev"][None], axis=1)
        wds = jnp.sum(s_act, axis=1)
        for _ in range(ODE_UNFOLDS):
            act = w_param[None] * jax.nn.sigmoid(
                (v[:, :, None] - params["mu"][None]) * params["sigma"][None])
            act = act * params["sparsity_mask"][None]
            wn = jnp.sum(act * params["erev"][None], axis=1) + wns
            wd = jnp.sum(act, axis=1) + wds
            num = cm_t * v + gleak * vleak + wn
            den = cm_t + gleak + wd
            v = num / (den + EPSILON)
        outs.append(v * params["output_w"] + params["output_b"])
    return jnp.stack(outs, axis=1), v


def init_params(key, sensory_size, units):
    """Deterministic synthetic init matching LTCCell._allocate_parameters
    (FullyConnected wiring: dense masks, random +/-1 reversal potentials)."""
    ks = jax.random.split(key, 8)
    u = lambda k, shape, lo, hi: jax.random.uniform(
        k, shape, jnp.float32, minval=lo, maxval=hi)
    S, U = sensory_size, units
    params = {
        "gleak": u(ks[0], (U,), 0.001, 1.0),
        "vleak": u(ks[1], (U,), -0.2, 0.2),
        "cm": u(ks[2], (U,), 0.4, 0.6),
        "sigma": u(ks[3], (U, U), 3.0, 8.0),
        "mu": u(ks[4], (U, U), 0.3, 0.8),
        "w": u(ks[5], (U, U), 0.001, 1.0),
        "sensory_sigma": u(ks[6], (S, U), 3.0, 8.0),
        "sensory_mu": u(jax.random.fold_in(key, 10), (S, U), 0.3, 0.8),
        "sensory_w": u(jax.random.fold_in(key, 11), (S, U), 0.001, 1.0),
        # FullyConnected wiring: polarity is random +/-1, mask is all ones
        "erev": jnp.sign(
            jax.random.uniform(ks[7], (U, U), jnp.float32) - 0.5).astype(jnp.float32),
        "sensory_erev": jnp.sign(
            jax.random.uniform(jax.random.fold_in(key, 12), (S, U), jnp.float32)
            - 0.5).astype(jnp.float32),
        "sparsity_mask": jnp.ones((U, U), jnp.float32),
        "sensory_sparsity_mask": jnp.ones((S, U), jnp.float32),
        "input_w": jnp.ones((S,), jnp.float32),
        "input_b": jnp.zeros((S,), jnp.float32),
        "output_w": jnp.ones((U,), jnp.float32),
        "output_b": jnp.zeros((U,), jnp.float32),
    }
    return params


if __name__ == "__main__":
    B, L, S, U = 2, 8, 4, 32  # batch, seq_len, input_size, units
    key = jax.random.PRNGKey(0)
    kx, kp = jax.random.split(key)

    x = jax.random.normal(kx, (B, L, S), jnp.float32)
    h0 = jnp.zeros((B, U), jnp.float32)  # LTC zero-initializes hidden state when hx=None
    params = init_params(kp, S, U)

    readout, h_final = jax.jit(ltc_forward)(x, h0, params)
    jax.block_until_ready((readout, h_final))

    ref_readout, ref_h = ltc_reference(x, h0, params)
    np.testing.assert_allclose(np.asarray(readout), np.asarray(ref_readout),
                               rtol=1e-4, atol=1e-4)
    np.testing.assert_allclose(np.asarray(h_final), np.asarray(ref_h),
                               rtol=1e-4, atol=1e-4)

    print("KERNEL_OK")
</pallas_src>

<mosaic_0001>
module attributes {stable_mosaic.version = 11 : i64} {
  func.func @ltc_kernel(%arg0: i32, %arg1: i32, %arg2: memref<2x8x4xf32, #tpu.memory_space<vmem>>, %arg3: memref<2x32xf32, #tpu.memory_space<vmem>>, %arg4: memref<5x32xf32, #tpu.memory_space<vmem>>, %arg5: memref<2x4xf32, #tpu.memory_space<vmem>>, %arg6: memref<4x32x32xf32, #tpu.memory_space<vmem>>, %arg7: memref<4x4x32xf32, #tpu.memory_space<vmem>>, %arg8: memref<2x8x32xf32, #tpu.memory_space<vmem>>, %arg9: memref<2x32xf32, #tpu.memory_space<vmem>>, %arg10: memref<2x32xf32, #tpu.memory_space<vmem>>, %arg11: memref<2x8x32xf32, #tpu.memory_space<vmem>>, %arg12: memref<2x8x32xf32, #tpu.memory_space<vmem>>) attributes {dimension_semantics = [#tpu.dimension_semantics<parallel>, #tpu.dimension_semantics<arbitrary>], iteration_bounds = array<i64: 1, 1>, scalar_prefetch = 0 : i64, scratch_operands = 3 : i64, tpu.core_type = #tpu.core_type<tc>, window_params = [{transform_indices = @transform_0, window_bounds = array<i64: 2, 8, 4>}, {transform_indices = @transform_1, window_bounds = array<i64: 2, 32>}, {pipeline_mode = #tpu.pipeline_mode<synchronous>, transform_indices = @transform_2, window_bounds = array<i64: 5, 32>}, {pipeline_mode = #tpu.pipeline_mode<synchronous>, transform_indices = @transform_3, window_bounds = array<i64: 2, 4>}, {pipeline_mode = #tpu.pipeline_mode<synchronous>, transform_indices = @transform_4, window_bounds = array<i64: 4, 32, 32>}, {pipeline_mode = #tpu.pipeline_mode<synchronous>, transform_indices = @transform_5, window_bounds = array<i64: 4, 4, 32>}, {transform_indices = @transform_6, window_bounds = array<i64: 2, 8, 32>}, {transform_indices = @transform_7, window_bounds = array<i64: 2, 32>}]} {
    %c0_i32 = arith.constant 0 : i32
    %0 = arith.cmpi eq, %arg1, %c0_i32 : i32
    %1 = arith.extui %0 : i1 to i32
    %c0_i32_0 = arith.constant 0 : i32
    %2 = arith.cmpi ne, %1, %c0_i32_0 : i32
    scf.if %2 {
      %c0_52 = arith.constant 0 : index
      %c0_53 = arith.constant 0 : index
      %153 = vector.load %arg3[%c0_52, %c0_53] : memref<2x32xf32, #tpu.memory_space<vmem>>, vector<2x32xf32>
      %c0_54 = arith.constant 0 : index
      %c0_55 = arith.constant 0 : index
      %154 = vector.load %arg10[%c0_54, %c0_55] : memref<2x32xf32, #tpu.memory_space<vmem>>, vector<2x32xf32>
      tpu.vector_store %arg10[%c0_54, %c0_55], %153 {strides = array<i32>} : memref<2x32xf32, #tpu.memory_space<vmem>>, vector<2x32xf32>,
    } else {
    }
    %c0 = arith.constant 0 : index
    %c0_1 = arith.constant 0 : index
    %c0_2 = arith.constant 0 : index
    %3 = vector.load %arg6[%c0, %c0_1, %c0_2] : memref<4x32x32xf32, #tpu.memory_space<vmem>>, vector<1x32x32xf32>
    %4 = vector.shape_cast %3 : vector<1x32x32xf32> to vector<32x32xf32>
    %5 = vector.shape_cast %4 : vector<32x32xf32> to vector<1x32x32xf32>
    %c1 = arith.constant 1 : index
    %c0_3 = arith.constant 0 : index
    %c0_4 = arith.constant 0 : index
    %6 = vector.load %arg6[%c1, %c0_3, %c0_4] : memref<4x32x32xf32, #tpu.memory_space<vmem>>, vector<1x32x32xf32>
    %7 = vector.shape_cast %6 : vector<1x32x32xf32> to vector<32x32xf32>
    %8 = vector.shape_cast %7 : vector<32x32xf32> to vector<1x32x32xf32>
    %c2 = arith.constant 2 : index
    %c0_5 = arith.constant 0 : index
    %c0_6 = arith.constant 0 : index
    %9 = vector.load %arg6[%c2, %c0_5, %c0_6] : memref<4x32x32xf32, #tpu.memory_space<vmem>>, vector<1x32x32xf32>
    %10 = vector.shape_cast %9 : vector<1x32x32xf32> to vector<32x32xf32>
    %11 = vector.shape_cast %10 : vector<32x32xf32> to vector<1x32x32xf32>
    %c3 = arith.constant 3 : index
    %c0_7 = arith.constant 0 : index
    %c0_8 = arith.constant 0 : index
    %12 = vector.load %arg6[%c3, %c0_7, %c0_8] : memref<4x32x32xf32, #tpu.memory_space<vmem>>, vector<1x32x32xf32>
    %13 = vector.shape_cast %12 : vector<1x32x32xf32> to vector<32x32xf32>
    %14 = vector.shape_cast %13 : vector<32x32xf32> to vector<1x32x32xf32>
    %c0_9 = arith.constant 0 : index
    %c0_10 = arith.constant 0 : index
    %15 = vector.load %arg4[%c0_9, %c0_10] : memref<5x32xf32, #tpu.memory_space<vmem>>, vector<1x32xf32>
    %16 = vector.shape_cast %15 : vector<1x32xf32> to vector<32xf32>
    %c1_11 = arith.constant 1 : index
    %c0_12 = arith.constant 0 : index
    %17 = vector.load %arg4[%c1_11, %c0_12] : memref<5x32xf32, #tpu.memory_space<vmem>>, vector<1x32xf32>
    %18 = vector.shape_cast %17 : vector<1x32xf32> to vector<32xf32>
    %c2_13 = arith.constant 2 : index
    %c0_14 = arith.constant 0 : index
    %19 = vector.load %arg4[%c2_13, %c0_14] : memref<5x32xf32, #tpu.memory_space<vmem>>, vector<1x32xf32>
    %20 = vector.shape_cast %19 : vector<1x32xf32> to vector<32xf32>
    %c3_15 = arith.constant 3 : index
    %c0_16 = arith.constant 0 : index
    %21 = vector.load %arg4[%c3_15, %c0_16] : memref<5x32xf32, #tpu.memory_space<vmem>>, vector<1x32xf32>
    %22 = vector.shape_cast %21 : vector<1x32xf32> to vector<32xf32>
    %c4 = arith.constant 4 : index
    %c0_17 = arith.constant 0 : index
    %23 = vector.load %arg4[%c4, %c0_17] : memref<5x32xf32, #tpu.memory_space<vmem>>, vector<1x32xf32>
    %24 = vector.shape_cast %23 : vector<1x32xf32> to vector<32xf32>
    %c0_18 = arith.constant 0 : index
    %c0_19 = arith.constant 0 : index
    %25 = vector.load %arg5[%c0_18, %c0_19] : memref<2x4xf32, #tpu.memory_space<vmem>>, vector<1x4xf32>
    %26 = vector.shape_cast %25 : vector<1x4xf32> to vector<4xf32>
    %c1_20 = arith.constant 1 : index
    %c0_21 = arith.constant 0 : index
    %27 = vector.load %arg5[%c1_20, %c0_21] : memref<2x4xf32, #tpu.memory_space<vmem>>, vector<1x4xf32>
    %28 = vector.shape_cast %27 : vector<1x4xf32> to vector<4xf32>
    %c0_22 = arith.constant 0 : index
    %c0_23 = arith.constant 0 : index
    %c0_24 = arith.constant 0 : index
    %29 = vector.load %arg7[%c0_22, %c0_23, %c0_24] : memref<4x4x32xf32, #tpu.memory_space<vmem>>, vector<1x4x32xf32>
    %30 = vector.shape_cast %29 : vector<1x4x32xf32> to vector<4x32xf32>
    %c1_25 = arith.constant 1 : index
    %c0_26 = arith.constant 0 : index
    %c0_27 = arith.constant 0 : index
    %31 = vector.load %arg7[%c1_25, %c0_26, %c0_27] : memref<4x4x32xf32, #tpu.memory_space<vmem>>, vector<1x4x32xf32>
    %32 = vector.shape_cast %31 : vector<1x4x32xf32> to vector<4x32xf32>
    %c2_28 = arith.constant 2 : index
    %c0_29 = arith.constant 0 : index
    %c0_30 = arith.constant 0 : index
    %33 = vector.load %arg7[%c2_28, %c0_29, %c0_30] : memref<4x4x32xf32, #tpu.memory_space<vmem>>, vector<1x4x32xf32>
    %34 = vector.shape_cast %33 : vector<1x4x32xf32> to vector<4x32xf32>
    %c3_31 = arith.constant 3 : index
    %c0_32 = arith.constant 0 : index
    %c0_33 = arith.constant 0 : index
    %35 = vector.load %arg7[%c3_31, %c0_32, %c0_33] : memref<4x4x32xf32, #tpu.memory_space<vmem>>, vector<1x4x32xf32>
    %36 = vector.shape_cast %35 : vector<1x4x32xf32> to vector<4x32xf32>
    %c0_34 = arith.constant 0 : index
    %c0_35 = arith.constant 0 : index
    %c0_36 = arith.constant 0 : index
    %37 = vector.load %arg2[%c0_34, %c0_35, %c0_36] : memref<2x8x4xf32, #tpu.memory_space<vmem>>, vector<2x8x4xf32>
    %38 = vector.shape_cast %26 : vector<4xf32> to vector<1x1x4xf32>
    %39 = vector.broadcast %38 : vector<1x1x4xf32> to vector<2x8x4xf32>
    %40 = arith.mulf %37, %39 : vector<2x8x4xf32>
    %41 = vector.shape_cast %28 : vector<4xf32> to vector<1x1x4xf32>
    %42 = vector.broadcast %41 : vector<1x1x4xf32> to vector<2x8x4xf32>
    %43 = arith.addf %40, %42 : vector<2x8x4xf32>
    %cst = arith.constant 0.000000e+00 : f32
    %44 = vector.broadcast %cst : f32 to vector<2x8x32xf32>
    %cst_37 = arith.constant 0.000000e+00 : f32
    %45 = vector.broadcast %cst_37 : f32 to vector<2x8x32xf32>
    %46 = vector.extract_strided_slice %43 {offsets = [0, 0, 0], sizes = [2, 8, 1], strides = [1, 1, 1]} : vector<2x8x4xf32> to vector<2x8x1xf32>
    %47 = vector.extract_strided_slice %32 {offsets = [0, 0], sizes = [1, 32], strides = [1, 1]} : vector<4x32xf32> to vector<1x32xf32>
    %48 = vector.shape_cast %47 : vector<1x32xf32> to vector<32xf32>
    %49 = vector.shape_cast %48 : vector<32xf32> to vector<1x1x32xf32>
    %50 = vector.broadcast %46 : vector<2x8x1xf32> to vector<2x8x32xf32>
    %51 = vector.broadcast %49 : vector<1x1x32xf32> to vector<2x8x32xf32>
    %52 = arith.subf %50, %51 : vector<2x8x32xf32>
    %53 = vector.extract_strided_slice %30 {offsets = [0, 0], sizes = [1, 32], strides = [1, 1]} : vector<4x32xf32> to vector<1x32xf32>
    %54 = vector.shape_cast %53 : vector<1x32xf32> to vector<32xf32>
    %55 = vector.shape_cast %54 : vector<32xf32> to vector<1x1x32xf32>
    %56 = vector.broadcast %55 : vector<1x1x32xf32> to vector<2x8x32xf32>
    %57 = arith.mulf %52, %56 : vector<2x8x32xf32>
    %58 = math.tanh %57 : vector<2x8x32xf32>
    %59 = vector.extract_strided_slice %36 {offsets = [0, 0], sizes = [1, 32], strides = [1, 1]} : vector<4x32xf32> to vector<1x32xf32>
    %60 = vector.shape_cast %59 : vector<1x32xf32> to vector<32xf32>
    %61 = vector.shape_cast %60 : vector<32xf32> to vector<1x1x32xf32>
    %62 = vector.broadcast %61 : vector<1x1x32xf32> to vector<2x8x32xf32>
    %63 = arith.mulf %62, %58 : vector<2x8x32xf32>
    %64 = arith.addf %44, %63 : vector<2x8x32xf32>
    %65 = vector.extract_strided_slice %34 {offsets = [0, 0], sizes = [1, 32], strides = [1, 1]} : vector<4x32xf32> to vector<1x32xf32>
    %66 = vector.shape_cast %65 : vector<1x32xf32> to vector<32xf32>
    %67 = vector.shape_cast %66 : vector<32xf32> to vector<1x1x32xf32>
    %68 = vector.broadcast %67 : vector<1x1x32xf32> to vector<2x8x32xf32>
    %69 = arith.mulf %68, %58 : vector<2x8x32xf32>
    %70 = arith.addf %45, %69 : vector<2x8x32xf32>
    %71 = vector.extract_strided_slice %43 {offsets = [0, 0, 1], sizes = [2, 8, 1], strides = [1, 1, 1]} : vector<2x8x4xf32> to vector<2x8x1xf32>
    %72 = vector.extract_strided_slice %32 {offsets = [1, 0], sizes = [1, 32], strides = [1, 1]} : vector<4x32xf32> to vector<1x32xf32>
    %73 = vector.shape_cast %72 : vector<1x32xf32> to vector<32xf32>
    %74 = vector.shape_cast %73 : vector<32xf32> to vector<1x1x32xf32>
    %75 = vector.broadcast %71 : vector<2x8x1xf32> to vector<2x8x32xf32>
    %76 = vector.broadcast %74 : vector<1x1x32xf32> to vector<2x8x32xf32>
    %77 = arith.subf %75, %76 : vector<2x8x32xf32>
    %78 = vector.extract_strided_slice %30 {offsets = [1, 0], sizes = [1, 32], strides = [1, 1]} : vector<4x32xf32> to vector<1x32xf32>
    %79 = vector.shape_cast %78 : vector<1x32xf32> to vector<32xf32>
    %80 = vector.shape_cast %79 : vector<32xf32> to vector<1x1x32xf32>
    %81 = vector.broadcast %80 : vector<1x1x32xf32> to vector<2x8x32xf32>
    %82 = arith.mulf %77, %81 : vector<2x8x32xf32>
    %83 = math.tanh %82 : vector<2x8x32xf32>
    %84 = vector.extract_strided_slice %36 {offsets = [1, 0], sizes = [1, 32], strides = [1, 1]} : vector<4x32xf32> to vector<1x32xf32>
    %85 = vector.shape_cast %84 : vector<1x32xf32> to vector<32xf32>
    %86 = vector.shape_cast %85 : vector<32xf32> to vector<1x1x32xf32>
    %87 = vector.broadcast %86 : vector<1x1x32xf32> to vector<2x8x32xf32>
    %88 = arith.mulf %87, %83 : vector<2x8x32xf32>
    %89 = arith.addf %64, %88 : vector<2x8x32xf32>
    %90 = vector.extract_strided_slice %34 {offsets = [1, 0], sizes = [1, 32], strides = [1, 1]} : vector<4x32xf32> to vector<1x32xf32>
    %91 = vector.shape_cast %90 : vector<1x32xf32> to vector<32xf32>
    %92 = vector.shape_cast %91 : vector<32xf32> to vector<1x1x32xf32>
    %93 = vector.broadcast %92 : vector<1x1x32xf32> to vector<2x8x32xf32>
    %94 = arith.mulf %93, %83 : vector<2x8x32xf32>
    %95 = arith.addf %70, %94 : vector<2x8x32xf32>
    %96 = vector.extract_strided_slice %43 {offsets = [0, 0, 2], sizes = [2, 8, 1], strides = [1, 1, 1]} : vector<2x8x4xf32> to vector<2x8x1xf32>
    %97 = vector.extract_strided_slice %32 {offsets = [2, 0], sizes = [1, 32], strides = [1, 1]} : vector<4x32xf32> to vector<1x32xf32>
    %98 = vector.shape_cast %97 : vector<1x32xf32> to vector<32xf32>
    %99 = vector.shape_cast %98 : vector<32xf32> to vector<1x1x32xf32>
    %100 = vector.broadcast %96 : vector<2x8x1xf32> to vector<2x8x32xf32>
    %101 = vector.broadcast %99 : vector<1x1x32xf32> to vector<2x8x32xf32>
    %102 = arith.subf %100, %101 : vector<2x8x32xf32>
    %103 = vector.extract_strided_slice %30 {offsets = [2, 0], sizes = [1, 32], strides = [1, 1]} : vector<4x32xf32> to vector<1x32xf32>
    %104 = vector.shape_cast %103 : vector<1x32xf32> to vector<32xf32>
    %105 = vector.shape_cast %104 : vector<32xf32> to vector<1x1x32xf32>
    %106 = vector.broadcast %105 : vector<1x1x32xf32> to vector<2x8x32xf32>
    %107 = arith.mulf %102, %106 : vector<2x8x32xf32>
    %108 = math.tanh %107 : vector<2x8x32xf32>
    %109 = vector.extract_strided_slice %36 {offsets = [2, 0], sizes = [1, 32], strides = [1, 1]} : vector<4x32xf32> to vector<1x32xf32>
    %110 = vector.shape_cast %109 : vector<1x32xf32> to vector<32xf32>
    %111 = vector.shape_cast %110 : vector<32xf32> to vector<1x1x32xf32>
    %112 = vector.broadcast %111 : vector<1x1x32xf32> to vector<2x8x32xf32>
    %113 = arith.mulf %112, %108 : vector<2x8x32xf32>
    %114 = arith.addf %89, %113 : vector<2x8x32xf32>
    %115 = vector.extract_strided_slice %34 {offsets = [2, 0], sizes = [1, 32], strides = [1, 1]} : vector<4x32xf32> to vector<1x32xf32>
    %116 = vector.shape_cast %115 : vector<1x32xf32> to vector<32xf32>
    %117 = vector.shape_cast %116 : vector<32xf32> to vector<1x1x32xf32>
    %118 = vector.broadcast %117 : vector<1x1x32xf32> to vector<2x8x32xf32>
    %119 = arith.mulf %118, %108 : vector<2x8x32xf32>
    %120 = arith.addf %95, %119 : vector<2x8x32xf32>
    %121 = vector.extract_strided_slice %43 {offsets = [0, 0, 3], sizes = [2, 8, 1], strides = [1, 1, 1]} : vector<2x8x4xf32> to vector<2x8x1xf32>
    %122 = vector.extract_strided_slice %32 {offsets = [3, 0], sizes = [1, 32], strides = [1, 1]} : vector<4x32xf32> to vector<1x32xf32>
    %123 = vector.shape_cast %122 : vector<1x32xf32> to vector<32xf32>
    %124 = vector.shape_cast %123 : vector<32xf32> to vector<1x1x32xf32>
    %125 = vector.broadcast %121 : vector<2x8x1xf32> to vector<2x8x32xf32>
    %126 = vector.broadcast %124 : vector<1x1x32xf32> to vector<2x8x32xf32>
    %127 = arith.subf %125, %126 : vector<2x8x32xf32>
    %128 = vector.extract_strided_slice %30 {offsets = [3, 0], sizes = [1, 32], strides = [1, 1]} : vector<4x32xf32> to vector<1x32xf32>
    %129 = vector.shape_cast %128 : vector<1x32xf32> to vector<32xf32>
    %130 = vector.shape_cast %129 : vector<32xf32> to vector<1x1x32xf32>
    %131 = vector.broadcast %130 : vector<1x1x32xf32> to vector<2x8x32xf32>
    %132 = arith.mulf %127, %131 : vector<2x8x32xf32>
    %133 = math.tanh %132 : vector<2x8x32xf32>
    %134 = vector.extract_strided_slice %36 {offsets = [3, 0], sizes = [1, 32], strides = [1, 1]} : vector<4x32xf32> to vector<1x32xf32>
    %135 = vector.shape_cast %134 : vector<1x32xf32> to vector<32xf32>
    %136 = vector.shape_cast %135 : vector<32xf32> to vector<1x1x32xf32>
    %137 = vector.broadcast %136 : vector<1x1x32xf32> to vector<2x8x32xf32>
    %138 = arith.mulf %137, %133 : vector<2x8x32xf32>
    %139 = arith.addf %114, %138 : vector<2x8x32xf32>
    %140 = vector.extract_strided_slice %34 {offsets = [3, 0], sizes = [1, 32], strides = [1, 1]} : vector<4x32xf32> to vector<1x32xf32>
    %141 = vector.shape_cast %140 : vector<1x32xf32> to vector<32xf32>
    %142 = vector.shape_cast %141 : vector<32xf32> to vector<1x1x32xf32>
    %143 = vector.broadcast %142 : vector<1x1x32xf32> to vector<2x8x32xf32>
    %144 = arith.mulf %143, %133 : vector<2x8x32xf32>
    %145 = arith.addf %120, %144 : vector<2x8x32xf32>
    %c0_38 = arith.constant 0 : index
    %c0_39 = arith.constant 0 : index
    %c0_40 = arith.constant 0 : index
    %146 = vector.load %arg11[%c0_38, %c0_39, %c0_40] : memref<2x8x32xf32, #tpu.memory_space<vmem>>, vector<2x8x32xf32>
    tpu.vector_store %arg11[%c0_38, %c0_39, %c0_40], %139 {strides = array<i32>} : memref<2x8x32xf32, #tpu.memory_space<vmem>>, vector<2x8x32xf32>,
    %c0_41 = arith.constant 0 : index
    %c0_42 = arith.constant 0 : index
    %c0_43 = arith.constant 0 : index
    %147 = vector.load %arg12[%c0_41, %c0_42, %c0_43] : memref<2x8x32xf32, #tpu.memory_space<vmem>>, vector<2x8x32xf32>
    tpu.vector_store %arg12[%c0_41, %c0_42, %c0_43], %145 {strides = array<i32>} : memref<2x8x32xf32, #tpu.memory_space<vmem>>, vector<2x8x32xf32>,
    %c0_44 = arith.constant 0 : index
    %c0_45 = arith.constant 0 : index
    %148 = vector.load %arg10[%c0_44, %c0_45] : memref<2x32xf32, #tpu.memory_space<vmem>>, vector<2x32xf32>
    %c0_i32_46 = arith.constant 0 : i32
    %c8_i32 = arith.constant 8 : i32
    %149 = arith.addi %c0_i32_46, %c8_i32 : i32
    %c1_i32 = arith.constant 1 : i32
    %150 = scf.for %arg13 = %c0_i32_46 to %149 step %c1_i32 iter_args(%arg14 = %148) -> (vector<2x32xf32>)  : i32 {
      %c0_52 = arith.constant 0 : index
      %153 = arith.index_cast %arg13 : i32 to index
      %c0_53 = arith.constant 0 : index
      %154 = vector.load %arg11[%c0_52, %153, %c0_53] : memref<2x8x32xf32, #tpu.memory_space<vmem>>, vector<2x1x32xf32>
      %155 = vector.shape_cast %154 : vector<2x1x32xf32> to vector<2x32xf32>
      %156 = vector.shape_cast %18 : vector<32xf32> to vector<1x32xf32>
      %157 = vector.broadcast %156 : vector<1x32xf32> to vector<2x32xf32>
      %158 = arith.addf %155, %157 : vector<2x32xf32>
      %c0_54 = arith.constant 0 : index
      %159 = arith.index_cast %arg13 : i32 to index
      %c0_55 = arith.constant 0 : index
      %160 = vector.load %arg12[%c0_54, %159, %c0_55] : memref<2x8x32xf32, #tpu.memory_space<vmem>>, vector<2x1x32xf32>
      %161 = vector.shape_cast %160 : vector<2x1x32xf32> to vector<2x32xf32>
      %162 = vector.shape_cast %20 : vector<32xf32> to vector<1x32xf32>
      %163 = vector.broadcast %162 : vector<1x32xf32> to vector<2x32xf32>
      %164 = arith.addf %161, %163 : vector<2x32xf32>
      %c0_i32_56 = arith.constant 0 : i32
      %165 = vector.shape_cast %arg14 : vector<2x32xf32> to vector<2x32x1xf32>
      %166 = vector.broadcast %165 : vector<2x32x1xf32> to vector<2x32x32xf32>
      %167 = vector.broadcast %8 : vector<1x32x32xf32> to vector<2x32x32xf32>
      %168 = arith.subf %166, %167 : vector<2x32x32xf32>
      %169 = vector.broadcast %5 : vector<1x32x32xf32> to vector<2x32x32xf32>
      %170 = arith.mulf %168, %169 : vector<2x32x32xf32>
      %171 = math.tanh %170 : vector<2x32x32xf32>
      %172 = vector.shape_cast %16 : vector<32xf32> to vector<1x32xf32>
      %173 = vector.broadcast %172 : vector<1x32xf32> to vector<2x32xf32>
      %174 = arith.mulf %173, %arg14 : vector<2x32xf32>
      %175 = vector.broadcast %14 : vector<1x32x32xf32> to vector<2x32x32xf32>
      %176 = arith.mulf %175, %171 : vector<2x32x32xf32>
      %cst_57 = arith.constant dense<0.000000e+00> : vector<2x32xf32>
      %177 = vector.multi_reduction <add>, %176, %cst_57 [1] : vector<2x32x32xf32> to vector<2x32xf32>
      %178 = arith.addf %174, %177 : vector<2x32xf32>
      %179 = arith.addf %178, %158 : vector<2x32xf32>
      %180 = vector.broadcast %11 : vector<1x32x32xf32> to vector<2x32x32xf32>
      %181 = arith.mulf %180, %171 : vector<2x32x32xf32>
      %cst_58 = arith.constant dense<0.000000e+00> : vector<2x32xf32>
      %182 = vector.multi_reduction <add>, %181, %cst_58 [1] : vector<2x32x32xf32> to vector<2x32xf32>
      %183 = arith.addf %182, %164 : vector<2x32xf32>
      %184 = arith.divf %179, %183 : vector<2x32xf32>
      %c1_i32_59 = arith.constant 1 : i32
      %185 = vector.shape_cast %184 : vector<2x32xf32> to vector<2x32x1xf32>
      %186 = vector.broadcast %185 : vector<2x32x1xf32> to vector<2x32x32xf32>
      %187 = vector.broadcast %8 : vector<1x32x32xf32> to vector<2x32x32xf32>
      %188 = arith.subf %186, %187 : vector<2x32x32xf32>
      %189 = vector.broadcast %5 : vector<1x32x32xf32> to vector<2x32x32xf32>
      %190 = arith.mulf %188, %189 : vector<2x32x32xf32>
      %191 = math.tanh %190 : vector<2x32x32xf32>
      %192 = vector.shape_cast %16 : vector<32xf32> to vector<1x32xf32>
      %193 = vector.broadcast %192 : vector<1x32xf32> to vector<2x32xf32>
      %194 = arith.mulf %193, %184 : vector<2x32xf32>
      %195 = vector.broadcast %14 : vector<1x32x32xf32> to vector<2x32x32xf32>
      %196 = arith.mulf %195, %191 : vector<2x32x32xf32>
      %cst_60 = arith.constant dense<0.000000e+00> : vector<2x32xf32>
      %197 = vector.multi_reduction <add>, %196, %cst_60 [1] : vector<2x32x32xf32> to vector<2x32xf32>
      %198 = arith.addf %194, %197 : vector<2x32xf32>
      %199 = arith.addf %198, %158 : vector<2x32xf32>
      %200 = vector.broadcast %11 : vector<1x32x32xf32> to vector<2x32x32xf32>
      %201 = arith.mulf %200, %191 : vector<2x32x32xf32>
      %cst_61 = arith.constant dense<0.000000e+00> : vector<2x32xf32>
      %202 = vector.multi_reduction <add>, %201, %cst_61 [1] : vector<2x32x32xf32> to vector<2x32xf32>
      %203 = arith.addf %202, %164 : vector<2x32xf32>
      %204 = arith.divf %199, %203 : vector<2x32xf32>
      %c2_i32 = arith.constant 2 : i32
      %205 = vector.shape_cast %204 : vector<2x32xf32> to vector<2x32x1xf32>
      %206 = vector.broadcast %205 : vector<2x32x1xf32> to vector<2x32x32xf32>
      %207 = vector.broadcast %8 : vector<1x32x32xf32> to vector<2x32x32xf32>
      %208 = arith.subf %206, %207 : vector<2x32x32xf32>
      %209 = vector.broadcast %5 : vector<1x32x32xf32> to vector<2x32x32xf32>
      %210 = arith.mulf %208, %209 : vector<2x32x32xf32>
      %211 = math.tanh %210 : vector<2x32x32xf32>
      %212 = vector.shape_cast %16 : vector<32xf32> to vector<1x32xf32>
      %213 = vector.broadcast %212 : vector<1x32xf32> to vector<2x32xf32>
      %214 = arith.mulf %213, %204 : vector<2x32xf32>
      %215 = vector.broadcast %14 : vector<1x32x32xf32> to vector<2x32x32xf32>
      %216 = arith.mulf %215, %211 : vector<2x32x32xf32>
      %cst_62 = arith.constant dense<0.000000e+00> : vector<2x32xf32>
      %217 = vector.multi_reduction <add>, %216, %cst_62 [1] : vector<2x32x32xf32> to vector<2x32xf32>
      %218 = arith.addf %214, %217 : vector<2x32xf32>
      %219 = arith.addf %218, %158 : vector<2x32xf32>
      %220 = vector.broadcast %11 : vector<1x32x32xf32> to vector<2x32x32xf32>
      %221 = arith.mulf %220, %211 : vector<2x32x32xf32>
      %cst_63 = arith.constant dense<0.000000e+00> : vector<2x32xf32>
      %222 = vector.multi_reduction <add>, %221, %cst_63 [1] : vector<2x32x32xf32> to vector<2x32xf32>
      %223 = arith.addf %222, %164 : vector<2x32xf32>
      %224 = arith.divf %219, %223 : vector<2x32xf32>
      %c3_i32 = arith.constant 3 : i32
      %225 = vector.shape_cast %224 : vector<2x32xf32> to vector<2x32x1xf32>
      %226 = vector.broadcast %225 : vector<2x32x1xf32> to vector<2x32x32xf32>
      %227 = vector.broadcast %8 : vector<1x32x32xf32> to vector<2x32x32xf32>
      %228 = arith.subf %226, %227 : vector<2x32x32xf32>
      %229 = vector.broadcast %5 : vector<1x32x32xf32> to vector<2x32x32xf32>
      %230 = arith.mulf %228, %229 : vector<2x32x32xf32>
      %231 = math.tanh %230 : vector<2x32x32xf32>
      %232 = vector.shape_cast %16 : vector<32xf32> to vector<1x32xf32>
      %233 = vector.broadcast %232 : vector<1x32xf32> to vector<2x32xf32>
      %234 = arith.mulf %233, %224 : vector<2x32xf32>
      %235 = vector.broadcast %14 : vector<1x32x32xf32> to vector<2x32x32xf32>
      %236 = arith.mulf %235, %231 : vector<2x32x32xf32>
      %cst_64 = arith.constant dense<0.000000e+00> : vector<2x32xf32>
      %237 = vector.multi_reduction <add>, %236, %cst_64 [1] : vector<2x32x32xf32> to vector<2x32xf32>
      %238 = arith.addf %234, %237 : vector<2x32xf32>
      %239 = arith.addf %238, %158 : vector<2x32xf32>
      %240 = vector.broadcast %11 : vector<1x32x32xf32> to vector<2x32x32xf32>
      %241 = arith.mulf %240, %231 : vector<2x32x32xf32>
      %cst_65 = arith.constant dense<0.000000e+00> : vector<2x32xf32>
      %242 = vector.multi_reduction <add>, %241, %cst_65 [1] : vector<2x32x32xf32> to vector<2x32xf32>
      %243 = arith.addf %242, %164 : vector<2x32xf32>
      %244 = arith.divf %239, %243 : vector<2x32xf32>
      %c4_i32 = arith.constant 4 : i32
      %245 = vector.shape_cast %244 : vector<2x32xf32> to vector<2x32x1xf32>
      %246 = vector.broadcast %245 : vector<2x32x1xf32> to vector<2x32x32xf32>
      %247 = vector.broadcast %8 : vector<1x32x32xf32> to vector<2x32x32xf32>
      %248 = arith.subf %246, %247 : vector<2x32x32xf32>
      %249 = vector.broadcast %5 : vector<1x32x32xf32> to vector<2x32x32xf32>
      %250 = arith.mulf %248, %249 : vector<2x32x32xf32>
      %251 = math.tanh %250 : vector<2x32x32xf32>
      %252 = vector.shape_cast %16 : vector<32xf32> to vector<1x32xf32>
      %253 = vector.broadcast %252 : vector<1x32xf32> to vector<2x32xf32>
      %254 = arith.mulf %253, %244 : vector<2x32xf32>
      %255 = vector.broadcast %14 : vector<1x32x32xf32> to vector<2x32x32xf32>
      %256 = arith.mulf %255, %251 : vector<2x32x32xf32>
      %cst_66 = arith.constant dense<0.000000e+00> : vector<2x32xf32>
      %257 = vector.multi_reduction <add>, %256, %cst_66 [1] : vector<2x32x32xf32> to vector<2x32xf32>
      %258 = arith.addf %254, %257 : vector<2x32xf32>
      %259 = arith.addf %258, %158 : vector<2x32xf32>
      %260 = vector.broadcast %11 : vector<1x32x32xf32> to vector<2x32x32xf32>
      %261 = arith.mulf %260, %251 : vector<2x32x32xf32>
      %cst_67 = arith.constant dense<0.000000e+00> : vector<2x32xf32>
      %262 = vector.multi_reduction <add>, %261, %cst_67 [1] : vector<2x32x32xf32> to vector<2x32xf32>
      %263 = arith.addf %262, %164 : vector<2x32xf32>
      %264 = arith.divf %259, %263 : vector<2x32xf32>
      %c5_i32 = arith.constant 5 : i32
      %265 = vector.shape_cast %264 : vector<2x32xf32> to vector<2x32x1xf32>
      %266 = vector.broadcast %265 : vector<2x32x1xf32> to vector<2x32x32xf32>
      %267 = vector.broadcast %8 : vector<1x32x32xf32> to vector<2x32x32xf32>
      %268 = arith.subf %266, %267 : vector<2x32x32xf32>
      %269 = vector.broadcast %5 : vector<1x32x32xf32> to vector<2x32x32xf32>
      %270 = arith.mulf %268, %269 : vector<2x32x32xf32>
      %271 = math.tanh %270 : vector<2x32x32xf32>
      %272 = vector.shape_cast %16 : vector<32xf32> to vector<1x32xf32>
      %273 = vector.broadcast %272 : vector<1x32xf32> to vector<2x32xf32>
      %274 = arith.mulf %273, %264 : vector<2x32xf32>
      %275 = vector.broadcast %14 : vector<1x32x32xf32> to vector<2x32x32xf32>
      %276 = arith.mulf %275, %271 : vector<2x32x32xf32>
      %cst_68 = arith.constant dense<0.000000e+00> : vector<2x32xf32>
      %277 = vector.multi_reduction <add>, %276, %cst_68 [1] : vector<2x32x32xf32> to vector<2x32xf32>
      %278 = arith.addf %274, %277 : vector<2x32xf32>
      %279 = arith.addf %278, %158 : vector<2x32xf32>
      %280 = vector.broadcast %11 : vector<1x32x32xf32> to vector<2x32x32xf32>
      %281 = arith.mulf %280, %271 : vector<2x32x32xf32>
      %cst_69 = arith.constant dense<0.000000e+00> : vector<2x32xf32>
      %282 = vector.multi_reduction <add>, %281, %cst_69 [1] : vector<2x32x32xf32> to vector<2x32xf32>
      %283 = arith.addf %282, %164 : vector<2x32xf32>
      %284 = arith.divf %279, %283 : vector<2x32xf32>
      %285 = vector.shape_cast %22 : vector<32xf32> to vector<1x32xf32>
      %286 = vector.broadcast %285 : vector<1x32xf32> to vector<2x32xf32>
      %287 = arith.mulf %284, %286 : vector<2x32xf32>
      %288 = vector.shape_cast %24 : vector<32xf32> to vector<1x32xf32>
      %289 = vector.broadcast %288 : vector<1x32xf32> to vector<2x32xf32>
      %290 = arith.addf %287, %289 : vector<2x32xf32>
      %291 = vector.shape_cast %290 : vector<2x32xf32> to vector<2x1x32xf32>
      %c0_70 = arith.constant 0 : index
      %292 = arith.index_cast %arg13 : i32 to index
      %c0_71 = arith.constant 0 : index
      %293 = vector.load %arg8[%c0_70, %292, %c0_71] : memref<2x8x32xf32, #tpu.memory_space<vmem>>, vector<2x1x32xf32>
      tpu.vector_store %arg8[%c0_70, %292, %c0_71], %291 {strides = array<i32>} : memref<2x8x32xf32, #tpu.memory_space<vmem>>, vector<2x1x32xf32>,
      scf.yield %284 : vector<2x32xf32>
    }
    %c8_i32_47 = arith.constant 8 : i32
    %c0_48 = arith.constant 0 : index
    %c0_49 = arith.constant 0 : index
    %151 = vector.load %arg10[%c0_48, %c0_49] : memref<2x32xf32, #tpu.memory_space<vmem>>, vector<2x32xf32>
    tpu.vector_store %arg10[%c0_48, %c0_49], %150 {strides = array<i32>} : memref<2x32xf32, #tpu.memory_space<vmem>>, vector<2x32xf32>,
    %c0_50 = arith.constant 0 : index
    %c0_51 = arith.constant 0 : index
    %152 = vector.load %arg9[%c0_50, %c0_51] : memref<2x32xf32, #tpu.memory_space<vmem>>, vector<2x32xf32>
    tpu.vector_store %arg9[%c0_50, %c0_51], %150 {strides = array<i32>} : memref<2x32xf32, #tpu.memory_space<vmem>>, vector<2x32xf32>,
    return
  }
  func.func @transform_0(%arg0: i32, %arg1: i32) -> (i32, i32, i32) {
    %c0_i32 = arith.constant 0 : i32
    %c0_i32_0 = arith.constant 0 : i32
    return %arg0, %arg1, %c0_i32 : i32, i32, i32
  }
  func.func @transform_1(%arg0: i32, %arg1: i32) -> (i32, i32) {
    %c0_i32 = arith.constant 0 : i32
    %c0_i32_0 = arith.constant 0 : i32
    return %arg0, %c0_i32 : i32, i32
  }
  func.func @transform_2(%arg0: i32, %arg1: i32) -> (i32, i32) {
    %c0_i32 = arith.constant 0 : i32
    %c0_i32_0 = arith.constant 0 : i32
    %c0_i32_1 = arith.constant 0 : i32
    return %c0_i32, %c0_i32_0 : i32, i32
  }
  func.func @transform_3(%arg0: i32, %arg1: i32) -> (i32, i32) {
    %c0_i32 = arith.constant 0 : i32
    %c0_i32_0 = arith.constant 0 : i32
    %c0_i32_1 = arith.constant 0 : i32
    return %c0_i32, %c0_i32_0 : i32, i32
  }
  func.func @transform_4(%arg0: i32, %arg1: i32) -> (i32, i32, i32) {
    %c0_i32 = arith.constant 0 : i32
    %c0_i32_0 = arith.constant 0 : i32
    %c0_i32_1 = arith.constant 0 : i32
    %c0_i32_2 = arith.constant 0 : i32
    return %c0_i32, %c0_i32_0, %c0_i32_1 : i32, i32, i32
  }
  func.func @transform_5(%arg0: i32, %arg1: i32) -> (i32, i32, i32) {
    %c0_i32 = arith.constant 0 : i32
    %c0_i32_0 = arith.constant 0 : i32
    %c0_i32_1 = arith.constant 0 : i32
    %c0_i32_2 = arith.constant 0 : i32
    return %c0_i32, %c0_i32_0, %c0_i32_1 : i32, i32, i32
  }
  func.func @transform_6(%arg0: i32, %arg1: i32) -> (i32, i32, i32) {
    %c0_i32 = arith.constant 0 : i32
    %c0_i32_0 = arith.constant 0 : i32
    return %arg0, %arg1, %c0_i32 : i32, i32, i32
  }
  func.func @transform_7(%arg0: i32, %arg1: i32) -> (i32, i32) {
    %c0_i32 = arith.constant 0 : i32
    %c0_i32_0 = arith.constant 0 : i32
    return %arg0, %c0_i32 : i32, i32
  }
}

</mosaic_0001>

<bundles_post_ra>
// kernel: ltc_forward.1
= control target key start
LH: loop header
LB: loop body
LE: loop exit
PB: predicated region body
PF: predicated region fallthrough
CT: control target
= control target key end

     0   :  { %13 = vsyncpa [#allocation6], 0  ;;  %v1476_v1 = vmov 1   ;;  %v1477_v2 = vmov 0   ;;  %s2105_s0 = inlined_call_operand.vmem [shape: f32[2,8,4], index: 0, kind: input, shape index: {}]   ;;  %s2106_s1 = inlined_call_operand.vmem [shape: f32[2,32], index: 1, kind: input, shape index: {}]   ;;  %s2107_s2 = inlined_call_operand.vmem [shape: f32[5,32], index: 2, kind: input, shape index: {}]   ;;  %s2108_s3 = inlined_call_operand.vmem [shape: f32[2,4], index: 3, kind: input, shape index: {}]   ;;  %s2109_s4 = inlined_call_operand.vmem [shape: f32[4,32,32], index: 4, kind: input, shape index: {}]   ;;  %s2110_s5 = inlined_call_operand.vmem [shape: f32[4,4,32], index: 5, kind: input, shape index: {}]   ;;  %s2111_s6 = inlined_call_operand.hbm [shape: f32[2,8,32], index: 6, kind: output, shape index: {0}]   ;;  %s2112_s7 = inlined_call_operand.hbm [shape: f32[2,32], index: 7, kind: output, shape index: {1}]  }
   0x1   :  { %v1250_v0 = vld [vmem:[%s2108_s3] ss:$0 sm:$0xff]  ;;  %1283 = vset.pattern.permute.xlu1 %v1476_v1  ;;  %1282 = vset.pattern.permute.xlu0 %v1477_v2  ;;  %v1251_v3 = vld [vmem:[%s2108_s3 + $0x1] ss:$0 sm:$0xff]  ;;  %v68_v5 = vld [vmem:[%s2105_s0 + $0x8] sm:$0xff] }
   0x2   :  { %v67_v4 = vld [vmem:[%s2105_s0] sm:$0xff]  ;;  %v74_v7 = vmul.f32 %v1250_v0, %v68_v5 }
   0x3   :  { %v73_v6 = vmul.f32 %v1250_v0, %v67_v4 }
   0x4   :  { %14 = vsyncpa [#allocation8], 0  ;;  %v80_v9 = vadd.f32 %v1251_v3, %v74_v7  ;;  %v1478_v10 = vmov 2   ;;  %v1479_v11 = vmov 3   ;;  %v31_v12 = vld [vmem:[%s2106_s1] sm:$0x3]  ;;  %v91_v35 = vlaneseq }
   0x5   :  { %v79_v8 = vadd.f32 %v1251_v3, %v73_v6  ;;  %vm32_vm0 = vcmask 254976   ;;  %v1544_v13 = vld [vmem:[%s2109_s4] sm:$0xff]  ;;  %v1549_v14 = vld [vmem:[%s2109_s4 + $0x8] sm:$0xff]  ;;  %v1554_v15 = vld [vmem:[%s2109_s4 + $0x10] sm:$0xff]  ;;  %vm235_vm1 = vcmask 261120  }
   0x6   :  { %33 = vst.msk [vmem:[#allocation2] sm:$0x3] %vm32_vm0, %v31_v12  ;;  %v1559_v16 = vld [vmem:[%s2109_s4 + $0x18] sm:$0xff]  ;;  %v1564_v17 = vld [vmem:[%s2109_s4 + $0x20] sm:$0xff]  ;;  %v1569_v18 = vld [vmem:[%s2109_s4 + $0x28] sm:$0xff]  ;;  %v1648_v36 = vshrl.u32 %v91_v35, 7 }
   0x7   :  { %122 = vperm.xlu1 %1283, %v79_v8   ;;  %83 = vperm.xlu0 %1282, %v79_v8   ;;  %v1574_v19 = vld [vmem:[%s2109_s4 + $0x30] sm:$0xff]  ;;  %v1579_v20 = vld [vmem:[%s2109_s4 + $0x38] sm:$0xff]  ;;  %v1584_v21 = vld [vmem:[%s2109_s4 + $0x40] sm:$0xff] }
   0x8   :  { %v1589_v22 = vld [vmem:[%s2109_s4 + $0x48] sm:$0xff]  ;;  %v1594_v23 = vld [vmem:[%s2109_s4 + $0x50] sm:$0xff]  ;;  %v1599_v24 = vld [vmem:[%s2109_s4 + $0x58] sm:$0xff]  ;;  %v1651_v37 = vsub.s32 1, %v1648_v36  ;;  %v1657_v39 = vsub.s32 0, %v1648_v36  ;;  %v169_v49 = vsub.s32 2, %v1648_v36 }
   0x9   :  { %v1604_v25 = vld [vmem:[%s2109_s4 + $0x60] sm:$0xff]  ;;  %v1609_v26 = vld [vmem:[%s2109_s4 + $0x68] sm:$0xff]  ;;  %v1614_v27 = vld [vmem:[%s2109_s4 + $0x70] sm:$0xff]  ;;  %v207_v58 = vsub.s32 3, %v1648_v36 }
   0xa   :  { %v1619_v28 = vld [vmem:[%s2109_s4 + $0x78] sm:$0xff]  ;;  %v1624_v29 = vld [vmem:[%s2107_s2] ss:$0 sm:$0xff]  ;;  %v1629_v30 = vld [vmem:[%s2107_s2 + $0x1] ss:$0 sm:$0xff] }
   0xb   :  { %126 = vperm.xlu1 %1283, %v80_v9   ;;  %88 = vperm.xlu0 %1282, %v80_v9   ;;  %v1634_v31 = vld [vmem:[%s2107_s2 + $0x2] ss:$0 sm:$0xff]  ;;  %v1639_v32 = vld [vmem:[%s2107_s2 + $0x3] ss:$0 sm:$0xff]  ;;  %v1644_v33 = vld [vmem:[%s2107_s2 + $0x4] ss:$0 sm:$0xff] }
   0xc   :  { %v1247_v38 = vld [vmem:[%s2110_s5 + $0x4] sm:$0xf]  ;;  %v60_v41 = vld [vmem:[%s2110_s5] sm:$0xf] }
   0xd   :  { %v1646_v34 = vld [vmem:[#allocation2] sm:$0x3]   ;;  %v132_v40 = vrot.slane %v1247_v38, %v1651_v37  ;;  %v94_v42 = vrot.slane %v1247_v38, %v1657_v39  ;;  %v138_v45 = vrot.slane %v60_v41, %v1651_v37  ;;  %v100_v47 = vrot.slane %v60_v41, %v1657_v39 }
   0xe   :  { %v170_v56 = vrot.slane %v1247_v38, %v169_v49  ;;  %v176_v60 = vrot.slane %v60_v41, %v169_v49  ;;  %v208_v1 = vrot.slane %v1247_v38, %v207_v58  ;;  %v214_v4 = vrot.slane %v60_v41, %v207_v58 }
   0xf   :  { %1285 = vset.pattern.permute.xlu1 %v1478_v10  ;;  %1284 = vset.pattern.permute.xlu0 %v1478_v10  ;;  %v1248_v10 = vld [vmem:[%s2110_s5 + $0x8] sm:$0xf] }
  0x10   :  { %164 = vperm.xlu1 %1285, %v80_v9   ;;  %160 = vperm.xlu0 %1284, %v79_v8   ;;  %v154_v41 = vrot.slane %v1248_v10, %v1651_v37 }
  0x14   :  { %1286 = vset.pattern.permute.xlu1 %v1479_v11  ;;  %1287 = vset.pattern.permute.xlu0 %v1479_v11 }
  0x15   :  { %198 = vperm.xlu1 %1286, %v79_v8   ;;  %202 = vperm.xlu0 %1287, %v80_v9   ;;  %v1249_v9 = vld [vmem:[%s2110_s5 + $0xc] sm:$0xf]  ;;  %s1685_s5 = smov 0  }
  0x16   :  { %v146_v38 = vrot.slane %v1249_v9, %v1651_v37 }
  0x86   :  { %v123_v43 = vpop.permute.xlu1 %122  ;;  %v84_v44 = vpop.permute.xlu0 %83 }
  0x87   :  { %v133_v46 = vsub.f32 %v123_v43, %v132_v40  ;;  %v95_v48 = vsub.f32 %v84_v44, %v94_v42  ;;  %v116_v43 = vrot.slane %v1248_v10, %v1657_v39 }
  0x89   :  { %v139_v52 = vmul.f32 %v138_v45, %v133_v46  ;;  %v101_v55 = vmul.f32 %v100_v47, %v95_v48  ;;  %v184_v46 = vrot.slane %v1249_v9, %v169_v49 }
  0x8a   :  { %v127_v50 = vpop.permute.xlu1 %126  ;;  %v89_v51 = vpop.permute.xlu0 %88 }
  0x8b   :  { %v134_v53 = vsub.f32 %v127_v50, %v132_v40  ;;  %v96_v54 = vsub.f32 %v89_v51, %v94_v42  ;;  %1288 = vtanh.f32 %v139_v52  ;;  %v108_v42 = vrot.slane %v1249_v9, %v1657_v39 }
  0x8c   :  { %1290 = vtanh.f32 %v101_v55 }
  0x8d   :  { %v140_v57 = vmul.f32 %v138_v45, %v134_v53  ;;  %v102_v59 = vmul.f32 %v100_v47, %v96_v54  ;;  %v192_v47 = vrot.slane %v1248_v10, %v169_v49 }
  0x8f   :  { %v165_v61 = vpop.permute.xlu1 %164  ;;  %v161_v62 = vpop.permute.xlu0 %160  ;;  %1292 = vtanh.f32 %v140_v57 }
  0x90   :  { %v172_v63 = vsub.f32 %v165_v61, %v170_v56  ;;  %v171_v0 = vsub.f32 %v161_v62, %v170_v56  ;;  %1294 = vtanh.f32 %v102_v59  ;;  %v222_v62 = vrot.slane %v1249_v9, %v207_v58 }
  0x92   :  { %v178_v2 = vmul.f32 %v176_v60, %v172_v63  ;;  %v177_v3 = vmul.f32 %v176_v60, %v171_v0  ;;  %v230_v63 = vrot.slane %v1248_v10, %v207_v58 }
  0x94   :  { %1296 = vtanh.f32 %v178_v2  ;;  %v199_v5 = vpop.permute.xlu1 %198  ;;  %v203_v6 = vpop.permute.xlu0 %202 }
  0x95   :  { %1298 = vtanh.f32 %v177_v3  ;;  %v209_v7 = vsub.f32 %v199_v5, %v208_v1  ;;  %v210_v8 = vsub.f32 %v203_v6, %v208_v1  ;;  %v1289_v35 = vpop.eup %1288 }
  0x96   :  { %v1291_v40 = vpop.eup %1290  ;;  %v147_v50 = vmul.f32 %v1289_v35, %v146_v38  ;;  %v155_v51 = vmul.f32 %v1289_v35, %v154_v41 }
  0x97   :  { %v215_v11 = vmul.f32 %v214_v4, %v209_v7  ;;  %v216_v12 = vmul.f32 %v214_v4, %v210_v8  ;;  %v109_v52 = vmul.f32 %v1291_v40, %v108_v42  ;;  %v117_v53 = vmul.f32 %v1291_v40, %v116_v43 }
  0x99   :  { %1300 = vtanh.f32 %v215_v11  ;;  %v1293_v44 = vpop.eup %1292  ;;  %v149_v2 = vadd.f32 %v147_v50, %v109_v52  ;;  %v157_v3 = vadd.f32 %v155_v51, %v117_v53 }
  0x9a   :  { %1302 = vtanh.f32 %v216_v12  ;;  %v1295_v45 = vpop.eup %1294  ;;  %v148_v55 = vmul.f32 %v1293_v44, %v146_v38  ;;  %v156_v56 = vmul.f32 %v1293_v44, %v154_v41 }
  0x9b   :  { %v110_v57 = vmul.f32 %v1295_v45, %v108_v42  ;;  %v118_v59 = vmul.f32 %v1295_v45, %v116_v43 }
  0x9d   :  { %v150_v49 = vadd.f32 %v148_v55, %v110_v57  ;;  %v158_v5 = vadd.f32 %v156_v56, %v118_v59 }
  0x9e   :  { %v1297_v48 = vpop.eup %1296 }
  0x9f   :  { %v1299_v54 = vpop.eup %1298  ;;  %v186_v0 = vmul.f32 %v1297_v48, %v184_v46  ;;  %v194_v1 = vmul.f32 %v1297_v48, %v192_v47 }
  0xa0   :  { %v185_v60 = vmul.f32 %v1299_v54, %v184_v46  ;;  %v193_v61 = vmul.f32 %v1299_v54, %v192_v47 }
  0xa1   :  { %v188_v35 = vadd.f32 %v186_v0, %v150_v49  ;;  %v196_v38 = vadd.f32 %v194_v1, %v158_v5 }
  0xa2   :  { %v187_v7 = vadd.f32 %v185_v60, %v149_v2  ;;  %v195_v8 = vadd.f32 %v193_v61, %v157_v3 }
  0xa3   :  { %v1301_v4 = vpop.eup %1300 }
  0xa4   :  { %v1303_v6 = vpop.eup %1302  ;;  %v223_v11 = vmul.f32 %v1301_v4, %v222_v62  ;;  %v231_v12 = vmul.f32 %v1301_v4, %v230_v63 }
  0xa5   :  { %v224_v40 = vmul.f32 %v1303_v6, %v222_v62  ;;  %v232_v41 = vmul.f32 %v1303_v6, %v230_v63 }
  0xa6   :  { %v225_v42 = vadd.f32 %v223_v11, %v187_v7  ;;  %v233_v9 = vadd.f32 %v231_v12, %v195_v8 }
  0xa7   :  { %v226_v58 = vadd.f32 %v224_v40, %v188_v35  ;;  %v234_v10 = vadd.f32 %v232_v41, %v196_v38 }
  0xa8   :  { %236 = vst.msk [vmem:[#allocation3] sm:$0xff] %vm235_vm1, %v225_v42  ;;  %238 = vst.msk [vmem:[#allocation4] sm:$0xff] %vm235_vm1, %v233_v9 }
  0xa9   :  { %237 = vst.msk [vmem:[#allocation3 + $0x8] sm:$0xff] %vm235_vm1, %v226_v58  ;;  %239 = vst.msk [vmem:[#allocation4 + $0x8] sm:$0xff] %vm235_vm1, %v234_v10 }
  0xaa LB: > { %v288_v43 = vrot.slane %v1470_v34, %v1651_v37  ;;  %v269_v44 = vrot.slane %v1470_v34, %v1657_v39  ;;  %s257_s30 = scalar_lea.vmem [#allocation4], %s1474_s5  ;;  %s248_s8 = scalar_lea.vmem [#allocation3], %s1474_s5  ;;  %vm369_vm2 = vcmask 1041409   ;;  %vm1188_vm3 = vcmask 253952   ;;  %s1474_s5 = sphi %s1685_s5, %s246_s5   ;;  %v1470_v34 = vphi %v1646_v34, %v2113_v34  }
  0xab   : > { %s1187_s0 = scalar_lea.vmem [#allocation5], %s1474_s5  ;;  %s246_s5 = sadd.s32 1, %s1474_s5  }
  0xac   : > { %290 = vbcast.lane.b32.xlu0 %v288_v43, 256  ;;  %271 = vbcast.lane.b32.xlu1 %v269_v44, 256  ;;  %p243_p0 = scmp.ge.s32.totalorder %s246_s5, 8  }
  0xad   :  { %s1481_s3 = smov (%p243_p0), [#allocation5]  }
  0xae   :  { %s1199_s9 = sshll.u32 (%p243_p0), %s1481_s3, 4  ;;  %s1200_s9 = int_to_ptr.vmem [resolvable:$true] %s1199_s9 }
  0xaf   :  { %s1412_s10 = scalar_lea.vmem (%p243_p0), %s1200_s9, 256  ;;  %p1417_p2 = scmp.lt.s32.totalorder (%p243_p0), %s1200_s9, %s1200_s9 }
  0xb0   : > { %294 = vbcast.lane.b32.xlu0 %v288_v43, 264  ;;  %275 = vbcast.lane.b32.xlu1 %v269_v44, 264  ;;  %p1413_p1 = scmp.ne.s32.totalorder (%p243_p0), %s1200_s9, %s1412_s10  ;;  %p1418_p3 = scmp.lt.s32.totalorder (%p243_p0), %s1412_s10, %s1412_s10 }
  0xb2   :  { %p1419_p4 = por (%p243_p0), %p1418_p3, %p1417_p2 }
  0xb4   : > { %298 = vbcast.lane.b32.xlu0 %v288_v43, 272  ;;  %279 = vbcast.lane.b32.xlu1 %v269_v44, 272  ;;  %p1420_p5 = pnand (%p243_p0), %p1419_p4, %p1413_p1 }
  0xb8   : > { %302 = vbcast.lane.b32.xlu0 %v288_v43, 280  ;;  %283 = vbcast.lane.b32.xlu1 %v269_v44, 280 }
 0x11e   : > { %v291_v45 = vpop.permute.xlu0 %290  ;;  %v272_v46 = vpop.permute.xlu1 %271 }
 0x11f   : > { %v308_v47 = vsub.f32 %v291_v45, %v1564_v17  ;;  %v304_v48 = vsub.f32 %v272_v46, %v1564_v17 }
 0x121   : > { %v316_v50 = vmul.f32 %v308_v47, %v1544_v13  ;;  %v312_v51 = vmul.f32 %v304_v48, %v1544_v13 }
 0x122   : > { %v295_v52 = vpop.permute.xlu0 %294  ;;  %v276_v53 = vpop.permute.xlu1 %275 }
 0x123   : > { %v309_v54 = vsub.f32 %v295_v52, %v1569_v18  ;;  %v305_v55 = vsub.f32 %v276_v53, %v1569_v18  ;;  %1304 = vtanh.f32 %v316_v50 }
 0x124   : > { %1306 = vtanh.f32 %v312_v51 }
 0x125   : > { %v317_v56 = vmul.f32 %v309_v54, %v1549_v14  ;;  %v313_v57 = vmul.f32 %v305_v55, %v1549_v14 }
 0x126   : > { %v299_v59 = vpop.permute.xlu0 %298  ;;  %v280_v60 = vpop.permute.xlu1 %279 }
 0x127   : > { %1308 = vtanh.f32 %v317_v56  ;;  %v310_v61 = vsub.f32 %v299_v59, %v1574_v19  ;;  %v306_v62 = vsub.f32 %v280_v60, %v1574_v19 }
 0x128   : > { %1310 = vtanh.f32 %v313_v57 }
 0x129   : > { %v318_v63 = vmul.f32 %v310_v61, %v1554_v15  ;;  %v314_v0 = vmul.f32 %v306_v62, %v1554_v15 }
 0x12a   : > { %v303_v1 = vpop.permute.xlu0 %302  ;;  %v284_v2 = vpop.permute.xlu1 %283 }
 0x12b   : > { %1312 = vtanh.f32 %v318_v63  ;;  %v311_v3 = vsub.f32 %v303_v1, %v1579_v20  ;;  %v307_v4 = vsub.f32 %v284_v2, %v1579_v20 }
 0x12c   : > { %1314 = vtanh.f32 %v314_v0 }
 0x12d   : > { %v319_v49 = vmul.f32 %v311_v3, %v1559_v16  ;;  %v315_v5 = vmul.f32 %v307_v4, %v1559_v16  ;;  %v1305_v6 = vpop.eup %1304 }
 0x12e   : > { %v1307_v7 = vpop.eup %1306  ;;  %v337_v11 = vmul.f32 %v1305_v6, %v1604_v25  ;;  %v383_v12 = vmul.f32 %v1305_v6, %v1584_v21 }
 0x12f   : > { %1316 = vtanh.f32 %v319_v49  ;;  %v333_v9 = vmul.f32 %v1307_v7, %v1604_v25  ;;  %v379_v58 = vmul.f32 %v1307_v7, %v1584_v21 }
 0x130   : > { %1318 = vtanh.f32 %v315_v5  ;;  %v354_v43 = vsel %vm235_vm1, %v337_v11, 0.0  ;;  %v400_v44 = vsel %vm235_vm1, %v383_v12, 0.0 }
 0x131   : > { %v1309_v8 = vpop.eup %1308  ;;  %v341_v55 = vsel %vm235_vm1, %v333_v9, 0.0  ;;  %v387_v56 = vsel %vm235_vm1, %v379_v58, 0.0 }
 0x132   : > { %v1311_v35 = vpop.eup %1310  ;;  %v338_v38 = vmul.f32 %v1309_v8, %v1609_v26  ;;  %v384_v40 = vmul.f32 %v1309_v8, %v1589_v22 }
 0x133   : > { %v334_v41 = vmul.f32 %v1311_v35, %v1609_v26  ;;  %v380_v42 = vmul.f32 %v1311_v35, %v1589_v22 }
 0x134   : > { %v355_v46 = vsel %vm235_vm1, %v338_v38, 0.0  ;;  %v401_v47 = vsel %vm235_vm1, %v384_v40, 0.0 }
 0x135   : > { %v1313_v10 = vpop.eup %1312  ;;  %v342_v51 = vsel %vm235_vm1, %v334_v41, 0.0  ;;  %v388_v52 = vsel %vm235_vm1, %v380_v42, 0.0  ;;  %v356_v61 = vadd.f32 %v355_v46, %v354_v43  ;;  %v402_v62 = vadd.f32 %v401_v47, %v400_v44 }
 0x136   : > { %v1315_v45 = vpop.eup %1314  ;;  %v339_v48 = vmul.f32 %v1313_v10, %v1614_v27  ;;  %v385_v50 = vmul.f32 %v1313_v10, %v1594_v23  ;;  %v343_v2 = vadd.f32 %v342_v51, %v341_v55  ;;  %v389_v3 = vadd.f32 %v388_v52, %v387_v56 }
 0x137   : > { %v335_v53 = vmul.f32 %v1315_v45, %v1614_v27  ;;  %v381_v54 = vmul.f32 %v1315_v45, %v1594_v23 }
 0x138   : > { %v357_v57 = vsel %vm235_vm1, %v339_v48, 0.0  ;;  %v403_v59 = vsel %vm235_vm1, %v385_v50, 0.0 }
 0x139   : > { %v1317_v60 = vpop.eup %1316  ;;  %v344_v63 = vsel %vm235_vm1, %v335_v53, 0.0  ;;  %v390_v0 = vsel %vm235_vm1, %v381_v54, 0.0  ;;  %v358_v5 = vadd.f32 %v357_v57, %v356_v61  ;;  %v404_v6 = vadd.f32 %v403_v59, %v402_v62  ;;  %v259_v54 = vld [vmem:[%s257_s30 + $0x8] sm:$0x1] }
 0x13a   : > { %v1319_v1 = vpop.eup %1318  ;;  %v340_v4 = vmul.f32 %v1317_v60, %v1619_v28  ;;  %v386_v49 = vmul.f32 %v1317_v60, %v1599_v24  ;;  %v345_v11 = vadd.f32 %v344_v63, %v343_v2  ;;  %v391_v12 = vadd.f32 %v390_v0, %v389_v3  ;;  %v258_v60 = vld [vmem:[%s257_s30] sm:$0x1] }
 0x13b   : > { %v336_v7 = vmul.f32 %v1319_v1, %v1619_v28  ;;  %v382_v8 = vmul.f32 %v1319_v1, %v1599_v24  ;;  %v1747_v63 = vadd.f32 %v1634_v31, %v259_v54  ;;  %v1750_v3 = vadd.f32 %v1634_v31, %v258_v60 }
 0x13c   : > { %v359_v35 = vsel %vm235_vm1, %v340_v4, 0.0  ;;  %v405_v38 = vsel %vm235_vm1, %v386_v49, 0.0 }
 0x13d   : > { %v360_v40 = vadd.f32 %v359_v35, %v358_v5  ;;  %v406_v41 = vadd.f32 %v405_v38, %v404_v6  ;;  %v346_v42 = vsel %vm235_vm1, %v336_v7, 0.0  ;;  %v392_v9 = vsel %vm235_vm1, %v382_v8, 0.0  ;;  %v250_v7 = vld [vmem:[%s248_s8 + $0x8] sm:$0x1] }
 0x13e   : > { %v347_v58 = vadd.f32 %v346_v42, %v345_v11  ;;  %v393_v10 = vadd.f32 %v392_v9, %v391_v12  ;;  %v256_v38 = vadd.f32 %v1629_v30, %v250_v7  ;;  %v332_v42 = vmul.f32 %v1470_v34, %v1624_v29 }
 0x13f   : > { %v361_v43 = vrot.slane %v360_v40, 4  ;;  %v407_v44 = vrot.slane %v406_v41, 4 }
 0x140   : > { %v348_v45 = vrot.slane %v347_v58, 4  ;;  %v394_v46 = vrot.slane %v393_v10, 4 }
 0x141   : > { %v362_v47 = vadd.f32 %v361_v43, %v360_v40  ;;  %v408_v48 = vadd.f32 %v407_v44, %v406_v41  ;;  %v249_v40 = vld [vmem:[%s248_s8] sm:$0x1] }
 0x142   : > { %v349_v50 = vadd.f32 %v348_v45, %v347_v58  ;;  %v395_v51 = vadd.f32 %v394_v46, %v393_v10  ;;  %v255_v9 = vadd.f32 %v1629_v30, %v249_v40  ;;  %v375_v10 = vrot.slane %v256_v38, 7 }
 0x143   : > { %v363_v52 = vrot.slane %v362_v47, 2  ;;  %v409_v53 = vrot.slane %v408_v48, 2 }
 0x144   : > { %v350_v55 = vrot.slane %v349_v50, 2  ;;  %v396_v56 = vrot.slane %v395_v51, 2  ;;  %v1762_v44 = vsel %vm369_vm2, %v375_v10, %v255_v9 }
 0x145   : > { %v410_v57 = vadd.f32 %v409_v53, %v408_v48  ;;  %v364_v59 = vadd.f32 %v363_v52, %v362_v47 }
 0x146   : > { %v351_v61 = vadd.f32 %v350_v55, %v349_v50  ;;  %v397_v62 = vadd.f32 %v396_v56, %v395_v51 }
 0x147   : > { %v411_v0 = vrot.slane %v410_v57, 1  ;;  %v365_v4 = vrot.slane %v364_v59, 1 }
 0x148   : > { %v398_v1 = vrot.slane %v397_v62, 1  ;;  %v352_v49 = vrot.slane %v351_v61, 1 }
 0x149   : > { %v412_v2 = vadd.f32 %v411_v0, %v410_v57  ;;  %v366_v12 = vadd.f32 %v365_v4, %v364_v59 }
 0x14a   : > { %v399_v5 = vadd.f32 %v398_v1, %v397_v62  ;;  %v353_v35 = vadd.f32 %v352_v49, %v351_v61 }
 0x14b   : > { %v414_v6 = vadd.f32 %v412_v2, %v1747_v63 }
 0x14c   : > { %v413_v11 = vadd.f32 %v399_v5, %v1750_v3  ;;  %v370_v58 = vsel %vm369_vm2, %v366_v12, %v353_v35 }
 0x14d   : > { %v417_v8 = vrot.slane %v414_v6, 7  ;;  %v372_v43 = vadd.f32 %v370_v58, %v332_v42 }
 0x14f   : > { %v418_v41 = vsel %vm369_vm2, %v417_v8, %v413_v11  ;;  %v378_v45 = vadd.f32 %v1762_v44, %v372_v43 }
 0x150   : > { %1320 = vrcp.f32 %v418_v41 }
 0x15a   : > { %v1321_v46 = vpop.eup %1320 }
 0x15b   : > { %v1765_v47 = vmul.f32 %v1321_v46, %v378_v45 }
 0x15d   : > { %v444_v48 = vrot.slane %v1765_v47, %v1651_v37  ;;  %v425_v34 = vrot.slane %v1765_v47, %v1657_v39 }
 0x15f   : > { %450 = vbcast.lane.b32.xlu1 %v444_v48, 264  ;;  %446 = vbcast.lane.b32.xlu0 %v444_v48, 256 }
 0x163   : > { %431 = vbcast.lane.b32.xlu1 %v425_v34, 264  ;;  %427 = vbcast.lane.b32.xlu0 %v425_v34, 256 }
 0x167   : > { %435 = vbcast.lane.b32.xlu1 %v425_v34, 272  ;;  %454 = vbcast.lane.b32.xlu0 %v444_v48, 272 }
 0x16b   : > { %439 = vbcast.lane.b32.xlu1 %v425_v34, 280  ;;  %458 = vbcast.lane.b32.xlu0 %v444_v48, 280 }
 0x1d1   : > { %v451_v50 = vpop.permute.xlu1 %450  ;;  %v447_v51 = vpop.permute.xlu0 %446 }
 0x1d2   : > { %v465_v52 = vsub.f32 %v451_v50, %v1569_v18  ;;  %v464_v53 = vsub.f32 %v447_v51, %v1564_v17 }
 0x1d4   : > { %v473_v54 = vmul.f32 %v465_v52, %v1549_v14  ;;  %v472_v55 = vmul.f32 %v464_v53, %v1544_v13 }
 0x1d5   : > { %v432_v56 = vpop.permute.xlu1 %431  ;;  %v428_v57 = vpop.permute.xlu0 %427 }
 0x1d6   : > { %v461_v59 = vsub.f32 %v432_v56, %v1569_v18  ;;  %v460_v60 = vsub.f32 %v428_v57, %v1564_v17  ;;  %1322 = vtanh.f32 %v473_v54 }
 0x1d7   : > { %1324 = vtanh.f32 %v472_v55 }
 0x1d8   : > { %v469_v61 = vmul.f32 %v461_v59, %v1549_v14  ;;  %v468_v62 = vmul.f32 %v460_v60, %v1544_v13 }
 0x1d9   : > { %v436_v0 = vpop.permute.xlu1 %435  ;;  %v455_v1 = vpop.permute.xlu0 %454 }
 0x1da   : > { %1326 = vtanh.f32 %v469_v61  ;;  %v462_v2 = vsub.f32 %v436_v0, %v1574_v19  ;;  %v466_v4 = vsub.f32 %v455_v1, %v1574_v19 }
 0x1db   : > { %1328 = vtanh.f32 %v468_v62 }
 0x1dc   : > { %v470_v49 = vmul.f32 %v462_v2, %v1554_v15  ;;  %v474_v5 = vmul.f32 %v466_v4, %v1554_v15 }
 0x1dd   : > { %v440_v6 = vpop.permute.xlu1 %439  ;;  %v459_v7 = vpop.permute.xlu0 %458 }
 0x1de   : > { %1330 = vtanh.f32 %v470_v49  ;;  %v463_v8 = vsub.f32 %v440_v6, %v1579_v20  ;;  %v467_v11 = vsub.f32 %v459_v7, %v1579_v20 }
 0x1df   : > { %1332 = vtanh.f32 %v474_v5 }
 0x1e0   : > { %v471_v12 = vmul.f32 %v463_v8, %v1559_v16  ;;  %v475_v35 = vmul.f32 %v467_v11, %v1559_v16  ;;  %v1323_v38 = vpop.eup %1322 }
 0x1e1   : > { %v1325_v40 = vpop.eup %1324  ;;  %v490_v42 = vmul.f32 %v1323_v38, %v1609_v26  ;;  %v530_v9 = vmul.f32 %v1323_v38, %v1589_v22 }
 0x1e2   : > { %1334 = vtanh.f32 %v471_v12  ;;  %v489_v45 = vmul.f32 %v1325_v40, %v1604_v25  ;;  %v529_v46 = vmul.f32 %v1325_v40, %v1584_v21 }
 0x1e3   : > { %1336 = vtanh.f32 %v475_v35  ;;  %v507_v51 = vsel %vm235_vm1, %v490_v42, 0.0  ;;  %v547_v52 = vsel %vm235_vm1, %v530_v9, 0.0 }
 0x1e4   : > { %v1327_v41 = vpop.eup %1326  ;;  %v506_v61 = vsel %vm235_vm1, %v489_v45, 0.0  ;;  %v546_v62 = vsel %vm235_vm1, %v529_v46, 0.0 }
 0x1e5   : > { %v1329_v58 = vpop.eup %1328  ;;  %v486_v10 = vmul.f32 %v1327_v41, %v1609_v26  ;;  %v526_v43 = vmul.f32 %v1327_v41, %v1589_v22  ;;  %v508_v12 = vadd.f32 %v507_v51, %v506_v61  ;;  %v548_v35 = vadd.f32 %v547_v52, %v546_v62 }
 0x1e6   : > { %v485_v48 = vmul.f32 %v1329_v58, %v1604_v25  ;;  %v525_v34 = vmul.f32 %v1329_v58, %v1584_v21 }
 0x1e7   : > { %v494_v53 = vsel %vm235_vm1, %v486_v10, 0.0  ;;  %v534_v54 = vsel %vm235_vm1, %v526_v43, 0.0 }
 0x1e8   : > { %v1331_v50 = vpop.eup %1330  ;;  %v493_v56 = vsel %vm235_vm1, %v485_v48, 0.0  ;;  %v533_v57 = vsel %vm235_vm1, %v525_v34, 0.0 }
 0x1e9   : > { %v1333_v55 = vpop.eup %1332  ;;  %v487_v59 = vmul.f32 %v1331_v50, %v1614_v27  ;;  %v527_v60 = vmul.f32 %v1331_v50, %v1594_v23  ;;  %v495_v5 = vadd.f32 %v494_v53, %v493_v56  ;;  %v535_v6 = vadd.f32 %v534_v54, %v533_v57 }
 0x1ea   : > { %v491_v0 = vmul.f32 %v1333_v55, %v1614_v27  ;;  %v531_v1 = vmul.f32 %v1333_v55, %v1594_v23 }
 0x1eb   : > { %v496_v2 = vsel %vm235_vm1, %v487_v59, 0.0  ;;  %v536_v4 = vsel %vm235_vm1, %v527_v60, 0.0 }
 0x1ec   : > { %v1335_v49 = vpop.eup %1334  ;;  %v509_v7 = vsel %vm235_vm1, %v491_v0, 0.0  ;;  %v549_v8 = vsel %vm235_vm1, %v531_v1, 0.0  ;;  %v497_v41 = vadd.f32 %v496_v2, %v495_v5  ;;  %v537_v42 = vadd.f32 %v536_v4, %v535_v6 }
 0x1ed   : > { %v1337_v11 = vpop.eup %1336  ;;  %v488_v38 = vmul.f32 %v1335_v49, %v1619_v28  ;;  %v528_v40 = vmul.f32 %v1335_v49, %v1599_v24  ;;  %v510_v10 = vadd.f32 %v509_v7, %v508_v12  ;;  %v550_v43 = vadd.f32 %v549_v8, %v548_v35 }
 0x1ee   : > { %v492_v9 = vmul.f32 %v1337_v11, %v1619_v28  ;;  %v532_v58 = vmul.f32 %v1337_v11, %v1599_v24 }
 0x1ef   : > { %v498_v45 = vsel %vm235_vm1, %v488_v38, 0.0  ;;  %v538_v46 = vsel %vm235_vm1, %v528_v40, 0.0 }
 0x1f0   : > { %v499_v48 = vadd.f32 %v498_v45, %v497_v41  ;;  %v539_v34 = vadd.f32 %v538_v46, %v537_v42  ;;  %v511_v50 = vsel %vm235_vm1, %v492_v9, 0.0  ;;  %v551_v51 = vsel %vm235_vm1, %v532_v58, 0.0 }
 0x1f1   : > { %v512_v52 = vadd.f32 %v511_v50, %v510_v10  ;;  %v552_v53 = vadd.f32 %v551_v51, %v550_v43  ;;  %v484_v46 = vmul.f32 %v1624_v29, %v1765_v47 }
 0x1f2   : > { %v500_v54 = vrot.slane %v499_v48, 4  ;;  %v540_v55 = vrot.slane %v539_v34, 4 }
 0x1f3   : > { %v513_v56 = vrot.slane %v512_v52, 4  ;;  %v553_v57 = vrot.slane %v552_v53, 4 }
 0x1f4   : > { %v501_v59 = vadd.f32 %v500_v54, %v499_v48  ;;  %v541_v60 = vadd.f32 %v540_v55, %v539_v34 }
 0x1f5   : > { %v514_v61 = vadd.f32 %v513_v56, %v512_v52  ;;  %v554_v62 = vadd.f32 %v553_v57, %v552_v53 }
 0x1f6   : > { %v502_v0 = vrot.slane %v501_v59, 2  ;;  %v542_v1 = vrot.slane %v541_v60, 2 }
 0x1f7   : > { %v515_v2 = vrot.slane %v514_v61, 2  ;;  %v555_v4 = vrot.slane %v554_v62, 2 }
 0x1f8   : > { %v543_v49 = vadd.f32 %v542_v1, %v541_v60  ;;  %v503_v6 = vadd.f32 %v502_v0, %v501_v59 }
 0x1f9   : > { %v556_v5 = vadd.f32 %v555_v4, %v554_v62  ;;  %v516_v8 = vadd.f32 %v515_v2, %v514_v61 }
 0x1fa   : > { %v544_v7 = vrot.slane %v543_v49, 1  ;;  %v504_v38 = vrot.slane %v503_v6, 1 }
 0x1fb   : > { %v557_v11 = vrot.slane %v556_v5, 1  ;;  %v517_v40 = vrot.slane %v516_v8, 1 }
 0x1fc   : > { %v545_v12 = vadd.f32 %v544_v7, %v543_v49  ;;  %v505_v58 = vadd.f32 %v504_v38, %v503_v6 }
 0x1fd   : > { %v558_v35 = vadd.f32 %v557_v11, %v556_v5  ;;  %v518_v10 = vadd.f32 %v517_v40, %v516_v8 }
 0x1fe   : > { %v559_v42 = vadd.f32 %v545_v12, %v1750_v3 }
 0x1ff   : > { %v560_v41 = vadd.f32 %v558_v35, %v1747_v63  ;;  %v521_v45 = vsel %vm369_vm2, %v518_v10, %v505_v58 }
 0x200   : > { %v523_v48 = vadd.f32 %v521_v45, %v484_v46 }
 0x201   : > { %v563_v9 = vrot.slane %v560_v41, 7 }
 0x202   : > { %v524_v34 = vadd.f32 %v523_v48, %v1762_v44 }
 0x203   : > { %v564_v43 = vsel %vm369_vm2, %v563_v9, %v559_v42 }
 0x204   : > { %1338 = vrcp.f32 %v564_v43 }
 0x20e   : > { %v1339_v50 = vpop.eup %1338 }
 0x20f   : > { %v1826_v51 = vmul.f32 %v1339_v50, %v524_v34 }
 0x211   : > { %v590_v52 = vrot.slane %v1826_v51, %v1651_v37  ;;  %v571_v53 = vrot.slane %v1826_v51, %v1657_v39 }
 0x213   : > { %596 = vbcast.lane.b32.xlu1 %v590_v52, 264  ;;  %592 = vbcast.lane.b32.xlu0 %v590_v52, 256 }
 0x217   : > { %577 = vbcast.lane.b32.xlu1 %v571_v53, 264  ;;  %573 = vbcast.lane.b32.xlu0 %v571_v53, 256 }
 0x21b   : > { %581 = vbcast.lane.b32.xlu1 %v571_v53, 272  ;;  %600 = vbcast.lane.b32.xlu0 %v590_v52, 272 }
 0x21f   : > { %585 = vbcast.lane.b32.xlu1 %v571_v53, 280  ;;  %604 = vbcast.lane.b32.xlu0 %v590_v52, 280 }
 0x285   : > { %v597_v47 = vpop.permute.xlu1 %596  ;;  %v593_v54 = vpop.permute.xlu0 %592 }
 0x286   : > { %v611_v55 = vsub.f32 %v597_v47, %v1569_v18  ;;  %v610_v56 = vsub.f32 %v593_v54, %v1564_v17 }
 0x288   : > { %v619_v57 = vmul.f32 %v611_v55, %v1549_v14  ;;  %v618_v59 = vmul.f32 %v610_v56, %v1544_v13 }
 0x289   : > { %v578_v60 = vpop.permute.xlu1 %577  ;;  %v574_v61 = vpop.permute.xlu0 %573 }
 0x28a   : > { %v607_v62 = vsub.f32 %v578_v60, %v1569_v18  ;;  %v606_v0 = vsub.f32 %v574_v61, %v1564_v17  ;;  %1340 = vtanh.f32 %v619_v57 }
 0x28b   : > { %1342 = vtanh.f32 %v618_v59 }
 0x28c   : > { %v615_v1 = vmul.f32 %v607_v62, %v1549_v14  ;;  %v614_v2 = vmul.f32 %v606_v0, %v1544_v13 }
 0x28d   : > { %v582_v4 = vpop.permute.xlu1 %581  ;;  %v601_v49 = vpop.permute.xlu0 %600 }
 0x28e   : > { %1344 = vtanh.f32 %v615_v1  ;;  %v608_v5 = vsub.f32 %v582_v4, %v1574_v19  ;;  %v612_v6 = vsub.f32 %v601_v49, %v1574_v19 }
 0x28f   : > { %1346 = vtanh.f32 %v614_v2 }
 0x290   : > { %v616_v7 = vmul.f32 %v608_v5, %v1554_v15  ;;  %v620_v8 = vmul.f32 %v612_v6, %v1554_v15 }
 0x291   : > { %v586_v11 = vpop.permute.xlu1 %585  ;;  %v605_v12 = vpop.permute.xlu0 %604 }
 0x292   : > { %1348 = vtanh.f32 %v616_v7  ;;  %v609_v35 = vsub.f32 %v586_v11, %v1579_v20  ;;  %v613_v38 = vsub.f32 %v605_v12, %v1579_v20 }
 0x293   : > { %1350 = vtanh.f32 %v620_v8 }
 0x294   : > { %v617_v40 = vmul.f32 %v609_v35, %v1559_v16  ;;  %v621_v41 = vmul.f32 %v613_v38, %v1559_v16  ;;  %v1341_v42 = vpop.eup %1340 }
 0x295   : > { %v1343_v9 = vpop.eup %1342  ;;  %v636_v10 = vmul.f32 %v1341_v42, %v1609_v26  ;;  %v676_v43 = vmul.f32 %v1341_v42, %v1589_v22 }
 0x296   : > { %1352 = vtanh.f32 %v617_v40  ;;  %v635_v34 = vmul.f32 %v1343_v9, %v1604_v25  ;;  %v675_v50 = vmul.f32 %v1343_v9, %v1584_v21 }
 0x297   : > { %1354 = vtanh.f32 %v621_v41  ;;  %v653_v54 = vsel %vm235_vm1, %v636_v10, 0.0  ;;  %v693_v55 = vsel %vm235_vm1, %v676_v43, 0.0 }
 0x298   : > { %v1345_v58 = vpop.eup %1344  ;;  %v652_v1 = vsel %vm235_vm1, %v635_v34, 0.0  ;;  %v692_v2 = vsel %vm235_vm1, %v675_v50, 0.0 }
 0x299   : > { %v1347_v45 = vpop.eup %1346  ;;  %v632_v46 = vmul.f32 %v1345_v58, %v1609_v26  ;;  %v672_v48 = vmul.f32 %v1345_v58, %v1589_v22  ;;  %v654_v40 = vadd.f32 %v653_v54, %v652_v1  ;;  %v694_v41 = vadd.f32 %v693_v55, %v692_v2 }
 0x29a   : > { %v631_v52 = vmul.f32 %v1347_v45, %v1604_v25  ;;  %v671_v53 = vmul.f32 %v1347_v45, %v1584_v21 }
 0x29b   : > { %v640_v56 = vsel %vm235_vm1, %v632_v46, 0.0  ;;  %v680_v57 = vsel %vm235_vm1, %v672_v48, 0.0 }
 0x29c   : > { %v1349_v47 = vpop.eup %1348  ;;  %v639_v60 = vsel %vm235_vm1, %v631_v52, 0.0  ;;  %v679_v61 = vsel %vm235_vm1, %v671_v53, 0.0 }
 0x29d   : > { %v1351_v59 = vpop.eup %1350  ;;  %v633_v62 = vmul.f32 %v1349_v47, %v1614_v27  ;;  %v673_v0 = vmul.f32 %v1349_v47, %v1594_v23  ;;  %v641_v8 = vadd.f32 %v640_v56, %v639_v60  ;;  %v681_v11 = vadd.f32 %v680_v57, %v679_v61 }
 0x29e   : > { %v637_v4 = vmul.f32 %v1351_v59, %v1614_v27  ;;  %v677_v49 = vmul.f32 %v1351_v59, %v1594_v23 }
 0x29f   : > { %v642_v5 = vsel %vm235_vm1, %v633_v62, 0.0  ;;  %v682_v6 = vsel %vm235_vm1, %v673_v0, 0.0 }
 0x2a0   : > { %v1353_v7 = vpop.eup %1352  ;;  %v655_v12 = vsel %vm235_vm1, %v637_v4, 0.0  ;;  %v695_v35 = vsel %vm235_vm1, %v677_v49, 0.0  ;;  %v643_v58 = vadd.f32 %v642_v5, %v641_v8  ;;  %v683_v10 = vadd.f32 %v682_v6, %v681_v11 }
 0x2a1   : > { %v1355_v38 = vpop.eup %1354  ;;  %v634_v42 = vmul.f32 %v1353_v7, %v1619_v28  ;;  %v674_v9 = vmul.f32 %v1353_v7, %v1599_v24  ;;  %v656_v46 = vadd.f32 %v655_v12, %v654_v40  ;;  %v696_v48 = vadd.f32 %v695_v35, %v694_v41 }
 0x2a2   : > { %v638_v43 = vmul.f32 %v1355_v38, %v1619_v28  ;;  %v678_v45 = vmul.f32 %v1355_v38, %v1599_v24 }
 0x2a3   : > { %v644_v34 = vsel %vm235_vm1, %v634_v42, 0.0  ;;  %v684_v50 = vsel %vm235_vm1, %v674_v9, 0.0 }
 0x2a4   : > { %v645_v52 = vadd.f32 %v644_v34, %v643_v58  ;;  %v685_v53 = vadd.f32 %v684_v50, %v683_v10  ;;  %v657_v47 = vsel %vm235_vm1, %v638_v43, 0.0  ;;  %v697_v54 = vsel %vm235_vm1, %v678_v45, 0.0 }
 0x2a5   : > { %v658_v55 = vadd.f32 %v657_v47, %v656_v46  ;;  %v698_v56 = vadd.f32 %v697_v54, %v696_v48  ;;  %v630_v50 = vmul.f32 %v1624_v29, %v1826_v51 }
 0x2a6   : > { %v646_v57 = vrot.slane %v645_v52, 4  ;;  %v686_v59 = vrot.slane %v685_v53, 4 }
 0x2a7   : > { %v659_v60 = vrot.slane %v658_v55, 4  ;;  %v699_v61 = vrot.slane %v698_v56, 4 }
 0x2a8   : > { %v647_v62 = vadd.f32 %v646_v57, %v645_v52  ;;  %v687_v0 = vadd.f32 %v686_v59, %v685_v53 }
 0x2a9   : > { %v660_v1 = vadd.f32 %v659_v60, %v658_v55  ;;  %v700_v2 = vadd.f32 %v699_v61, %v698_v56 }
 0x2aa   : > { %v648_v4 = vrot.slane %v647_v62, 2  ;;  %v688_v49 = vrot.slane %v687_v0, 2 }
 0x2ab   : > { %v661_v5 = vrot.slane %v660_v1, 2  ;;  %v701_v6 = vrot.slane %v700_v2, 2 }
 0x2ac   : > { %v689_v7 = vadd.f32 %v688_v49, %v687_v0  ;;  %v649_v11 = vadd.f32 %v648_v4, %v647_v62 }
 0x2ad   : > { %v702_v8 = vadd.f32 %v701_v6, %v700_v2  ;;  %v662_v35 = vadd.f32 %v661_v5, %v660_v1 }
 0x2ae   : > { %v690_v12 = vrot.slane %v689_v7, 1  ;;  %v650_v42 = vrot.slane %v649_v11, 1 }
 0x2af   : > { %v703_v38 = vrot.slane %v702_v8, 1  ;;  %v663_v9 = vrot.slane %v662_v35, 1 }
 0x2b0   : > { %v691_v40 = vadd.f32 %v690_v12, %v689_v7  ;;  %v651_v45 = vadd.f32 %v650_v42, %v649_v11 }
 0x2b1   : > { %v704_v41 = vadd.f32 %v703_v38, %v702_v8  ;;  %v664_v46 = vadd.f32 %v663_v9, %v662_v35 }
 0x2b2   : > { %v705_v10 = vadd.f32 %v691_v40, %v1750_v3 }
 0x2b3   : > { %v706_v58 = vadd.f32 %v704_v41, %v1747_v63  ;;  %v667_v34 = vsel %vm369_vm2, %v664_v46, %v651_v45 }
 0x2b4   : > { %v669_v52 = vadd.f32 %v667_v34, %v630_v50 }
 0x2b5   : > { %v709_v43 = vrot.slane %v706_v58, 7 }
 0x2b6   : > { %v670_v53 = vadd.f32 %v669_v52, %v1762_v44 }
 0x2b7   : > { %v710_v48 = vsel %vm369_vm2, %v709_v43, %v705_v10 }
 0x2b8   : > { %1356 = vrcp.f32 %v710_v48 }
 0x2c2   : > { %v1357_v47 = vpop.eup %1356 }
 0x2c3   : > { %v1887_v54 = vmul.f32 %v1357_v47, %v670_v53 }
 0x2c5   : > { %v736_v55 = vrot.slane %v1887_v54, %v1651_v37  ;;  %v717_v56 = vrot.slane %v1887_v54, %v1657_v39 }
 0x2c7   : > { %742 = vbcast.lane.b32.xlu1 %v736_v55, 264  ;;  %738 = vbcast.lane.b32.xlu0 %v736_v55, 256 }
 0x2cb   : > { %723 = vbcast.lane.b32.xlu1 %v717_v56, 264  ;;  %719 = vbcast.lane.b32.xlu0 %v717_v56, 256 }
 0x2cf   : > { %727 = vbcast.lane.b32.xlu1 %v717_v56, 272  ;;  %746 = vbcast.lane.b32.xlu0 %v736_v55, 272 }
 0x2d3   : > { %731 = vbcast.lane.b32.xlu1 %v717_v56, 280  ;;  %750 = vbcast.lane.b32.xlu0 %v736_v55, 280 }
 0x339   : > { %v743_v51 = vpop.permute.xlu1 %742  ;;  %v739_v57 = vpop.permute.xlu0 %738 }
 0x33a   : > { %v757_v59 = vsub.f32 %v743_v51, %v1569_v18  ;;  %v756_v60 = vsub.f32 %v739_v57, %v1564_v17 }
 0x33c   : > { %v765_v61 = vmul.f32 %v757_v59, %v1549_v14  ;;  %v764_v62 = vmul.f32 %v756_v60, %v1544_v13 }
 0x33d   : > { %v724_v0 = vpop.permute.xlu1 %723  ;;  %v720_v1 = vpop.permute.xlu0 %719 }
 0x33e   : > { %v753_v2 = vsub.f32 %v724_v0, %v1569_v18  ;;  %v752_v4 = vsub.f32 %v720_v1, %v1564_v17  ;;  %1358 = vtanh.f32 %v765_v61 }
 0x33f   : > { %1360 = vtanh.f32 %v764_v62 }
 0x340   : > { %v761_v49 = vmul.f32 %v753_v2, %v1549_v14  ;;  %v760_v5 = vmul.f32 %v752_v4, %v1544_v13 }
 0x341   : > { %v728_v6 = vpop.permute.xlu1 %727  ;;  %v747_v7 = vpop.permute.xlu0 %746 }
 0x342   : > { %1362 = vtanh.f32 %v761_v49  ;;  %v754_v8 = vsub.f32 %v728_v6, %v1574_v19  ;;  %v758_v11 = vsub.f32 %v747_v7, %v1574_v19 }
 0x343   : > { %1364 = vtanh.f32 %v760_v5 }
 0x344   : > { %v762_v12 = vmul.f32 %v754_v8, %v1554_v15  ;;  %v766_v35 = vmul.f32 %v758_v11, %v1554_v15 }
 0x345   : > { %v732_v38 = vpop.permute.xlu1 %731  ;;  %v751_v40 = vpop.permute.xlu0 %750 }
 0x346   : > { %1366 = vtanh.f32 %v762_v12  ;;  %v755_v41 = vsub.f32 %v732_v38, %v1579_v20  ;;  %v759_v42 = vsub.f32 %v751_v40, %v1579_v20 }
 0x347   : > { %1368 = vtanh.f32 %v766_v35 }
 0x348   : > { %v763_v9 = vmul.f32 %v755_v41, %v1559_v16  ;;  %v767_v58 = vmul.f32 %v759_v42, %v1559_v16  ;;  %v1359_v10 = vpop.eup %1358 }
 0x349   : > { %v1361_v43 = vpop.eup %1360  ;;  %v782_v46 = vmul.f32 %v1359_v10, %v1609_v26  ;;  %v822_v48 = vmul.f32 %v1359_v10, %v1589_v22 }
 0x34a   : > { %1370 = vtanh.f32 %v763_v9  ;;  %v781_v53 = vmul.f32 %v1361_v43, %v1604_v25  ;;  %v821_v47 = vmul.f32 %v1361_v43, %v1584_v21 }
 0x34b   : > { %1372 = vtanh.f32 %v767_v58  ;;  %v799_v57 = vsel %vm235_vm1, %v782_v46, 0.0  ;;  %v839_v59 = vsel %vm235_vm1, %v822_v48, 0.0 }
 0x34c   : > { %v1363_v45 = vpop.eup %1362  ;;  %v798_v49 = vsel %vm235_vm1, %v781_v53, 0.0  ;;  %v838_v5 = vsel %vm235_vm1, %v821_v47, 0.0 }
 0x34d   : > { %v1365_v34 = vpop.eup %1364  ;;  %v778_v50 = vmul.f32 %v1363_v45, %v1609_v26  ;;  %v818_v52 = vmul.f32 %v1363_v45, %v1589_v22  ;;  %v800_v9 = vadd.f32 %v799_v57, %v798_v49  ;;  %v840_v58 = vadd.f32 %v839_v59, %v838_v5 }
 0x34e   : > { %v777_v55 = vmul.f32 %v1365_v34, %v1604_v25  ;;  %v817_v56 = vmul.f32 %v1365_v34, %v1584_v21 }
 0x34f   : > { %v786_v60 = vsel %vm235_vm1, %v778_v50, 0.0  ;;  %v826_v61 = vsel %vm235_vm1, %v818_v52, 0.0 }
 0x350   : > { %v1367_v51 = vpop.eup %1366  ;;  %v785_v0 = vsel %vm235_vm1, %v777_v55, 0.0  ;;  %v825_v1 = vsel %vm235_vm1, %v817_v56, 0.0 }
 0x351   : > { %v1369_v62 = vpop.eup %1368  ;;  %v779_v2 = vmul.f32 %v1367_v51, %v1614_v27  ;;  %v819_v4 = vmul.f32 %v1367_v51, %v1594_v23  ;;  %v787_v35 = vadd.f32 %v786_v60, %v785_v0  ;;  %v827_v38 = vadd.f32 %v826_v61, %v825_v1 }
 0x352   : > { %v783_v6 = vmul.f32 %v1369_v62, %v1614_v27  ;;  %v823_v7 = vmul.f32 %v1369_v62, %v1594_v23 }
 0x353   : > { %v788_v8 = vsel %vm235_vm1, %v779_v2, 0.0  ;;  %v828_v11 = vsel %vm235_vm1, %v819_v4, 0.0 }
 0x354   : > { %v1371_v12 = vpop.eup %1370  ;;  %v801_v40 = vsel %vm235_vm1, %v783_v6, 0.0  ;;  %v841_v41 = vsel %vm235_vm1, %v823_v7, 0.0  ;;  %v789_v45 = vadd.f32 %v788_v8, %v787_v35  ;;  %v829_v46 = vadd.f32 %v828_v11, %v827_v38 }
 0x355   : > { %v1373_v42 = vpop.eup %1372  ;;  %v780_v10 = vmul.f32 %v1371_v12, %v1619_v28  ;;  %v820_v43 = vmul.f32 %v1371_v12, %v1599_v24  ;;  %v802_v50 = vadd.f32 %v801_v40, %v800_v9  ;;  %v842_v52 = vadd.f32 %v841_v41, %v840_v58 }
 0x356   : > { %v784_v48 = vmul.f32 %v1373_v42, %v1619_v28  ;;  %v824_v34 = vmul.f32 %v1373_v42, %v1599_v24 }
 0x357   : > { %v790_v53 = vsel %vm235_vm1, %v780_v10, 0.0  ;;  %v830_v47 = vsel %vm235_vm1, %v820_v43, 0.0 }
 0x358   : > { %v791_v55 = vadd.f32 %v790_v53, %v789_v45  ;;  %v831_v56 = vadd.f32 %v830_v47, %v829_v46  ;;  %v803_v51 = vsel %vm235_vm1, %v784_v48, 0.0  ;;  %v843_v57 = vsel %vm235_vm1, %v824_v34, 0.0 }
 0x359   : > { %v804_v59 = vadd.f32 %v803_v51, %v802_v50  ;;  %v844_v60 = vadd.f32 %v843_v57, %v842_v52  ;;  %v776_v47 = vmul.f32 %v1624_v29, %v1887_v54 }
 0x35a   : > { %v792_v61 = vrot.slane %v791_v55, 4  ;;  %v832_v62 = vrot.slane %v831_v56, 4 }
 0x35b   : > { %v805_v0 = vrot.slane %v804_v59, 4  ;;  %v845_v1 = vrot.slane %v844_v60, 4 }
 0x35c   : > { %v793_v2 = vadd.f32 %v792_v61, %v791_v55  ;;  %v833_v4 = vadd.f32 %v832_v62, %v831_v56 }
 0x35d   : > { %v806_v49 = vadd.f32 %v805_v0, %v804_v59  ;;  %v846_v5 = vadd.f32 %v845_v1, %v844_v60 }
 0x35e   : > { %v794_v6 = vrot.slane %v793_v2, 2  ;;  %v834_v7 = vrot.slane %v833_v4, 2 }
 0x35f   : > { %v807_v8 = vrot.slane %v806_v49, 2  ;;  %v847_v11 = vrot.slane %v846_v5, 2 }
 0x360   : > { %v835_v12 = vadd.f32 %v834_v7, %v833_v4  ;;  %v795_v38 = vadd.f32 %v794_v6, %v793_v2 }
 0x361   : > { %v848_v35 = vadd.f32 %v847_v11, %v846_v5  ;;  %v808_v41 = vadd.f32 %v807_v8, %v806_v49 }
 0x362   : > { %v836_v40 = vrot.slane %v835_v12, 1  ;;  %v796_v10 = vrot.slane %v795_v38, 1 }
 0x363   : > { %v849_v42 = vrot.slane %v848_v35, 1  ;;  %v809_v43 = vrot.slane %v808_v41, 1 }
 0x364   : > { %v837_v9 = vadd.f32 %v836_v40, %v835_v12  ;;  %v797_v34 = vadd.f32 %v796_v10, %v795_v38 }
 0x365   : > { %v850_v58 = vadd.f32 %v849_v42, %v848_v35  ;;  %v810_v50 = vadd.f32 %v809_v43, %v808_v41 }
 0x366   : > { %v851_v46 = vadd.f32 %v837_v9, %v1750_v3 }
 0x367   : > { %v852_v45 = vadd.f32 %v850_v58, %v1747_v63  ;;  %v813_v53 = vsel %vm369_vm2, %v810_v50, %v797_v34 }
 0x368   : > { %v815_v55 = vadd.f32 %v813_v53, %v776_v47 }
 0x369   : > { %v855_v48 = vrot.slane %v852_v45, 7 }
 0x36a   : > { %v816_v56 = vadd.f32 %v815_v55, %v1762_v44 }
 0x36b   : > { %v856_v52 = vsel %vm369_vm2, %v855_v48, %v851_v46 }
 0x36c   : > { %1374 = vrcp.f32 %v856_v52 }
 0x376   : > { %v1375_v51 = vpop.eup %1374 }
 0x377   : > { %v1948_v57 = vmul.f32 %v1375_v51, %v816_v56 }
 0x379   : > { %v882_v59 = vrot.slane %v1948_v57, %v1651_v37  ;;  %v863_v60 = vrot.slane %v1948_v57, %v1657_v39 }
 0x37b   : > { %888 = vbcast.lane.b32.xlu1 %v882_v59, 264  ;;  %884 = vbcast.lane.b32.xlu0 %v882_v59, 256 }
 0x37f   : > { %869 = vbcast.lane.b32.xlu1 %v863_v60, 264  ;;  %865 = vbcast.lane.b32.xlu0 %v863_v60, 256 }
 0x383   : > { %873 = vbcast.lane.b32.xlu1 %v863_v60, 272  ;;  %892 = vbcast.lane.b32.xlu0 %v882_v59, 272 }
 0x387   : > { %877 = vbcast.lane.b32.xlu1 %v863_v60, 280  ;;  %896 = vbcast.lane.b32.xlu0 %v882_v59, 280 }
 0x3ed   : > { %v889_v54 = vpop.permute.xlu1 %888  ;;  %v885_v61 = vpop.permute.xlu0 %884 }
 0x3ee   : > { %v903_v62 = vsub.f32 %v889_v54, %v1569_v18  ;;  %v902_v0 = vsub.f32 %v885_v61, %v1564_v17 }
 0x3f0   : > { %v911_v1 = vmul.f32 %v903_v62, %v1549_v14  ;;  %v910_v2 = vmul.f32 %v902_v0, %v1544_v13 }
 0x3f1   : > { %v870_v4 = vpop.permute.xlu1 %869  ;;  %v866_v49 = vpop.permute.xlu0 %865 }
 0x3f2   : > { %v899_v5 = vsub.f32 %v870_v4, %v1569_v18  ;;  %v898_v6 = vsub.f32 %v866_v49, %v1564_v17  ;;  %1376 = vtanh.f32 %v911_v1 }
 0x3f3   : > { %1378 = vtanh.f32 %v910_v2 }
 0x3f4   : > { %v907_v7 = vmul.f32 %v899_v5, %v1549_v14  ;;  %v906_v8 = vmul.f32 %v898_v6, %v1544_v13 }
 0x3f5   : > { %v874_v11 = vpop.permute.xlu1 %873  ;;  %v893_v12 = vpop.permute.xlu0 %892 }
 0x3f6   : > { %1380 = vtanh.f32 %v907_v7  ;;  %v900_v35 = vsub.f32 %v874_v11, %v1574_v19  ;;  %v904_v38 = vsub.f32 %v893_v12, %v1574_v19 }
 0x3f7   : > { %1382 = vtanh.f32 %v906_v8 }
 0x3f8   : > { %v908_v40 = vmul.f32 %v900_v35, %v1554_v15  ;;  %v912_v41 = vmul.f32 %v904_v38, %v1554_v15 }
 0x3f9   : > { %v878_v42 = vpop.permute.xlu1 %877  ;;  %v897_v9 = vpop.permute.xlu0 %896 }
 0x3fa   : > { %1384 = vtanh.f32 %v908_v40  ;;  %v901_v58 = vsub.f32 %v878_v42, %v1579_v20  ;;  %v905_v10 = vsub.f32 %v897_v9, %v1579_v20 }
 0x3fb   : > { %1386 = vtanh.f32 %v912_v41 }
 0x3fc   : > { %v909_v43 = vmul.f32 %v901_v58, %v1559_v16  ;;  %v913_v45 = vmul.f32 %v905_v10, %v1559_v16  ;;  %v1377_v46 = vpop.eup %1376 }
 0x3fd   : > { %v1379_v48 = vpop.eup %1378  ;;  %v928_v50 = vmul.f32 %v1377_v46, %v1609_v26  ;;  %v968_v52 = vmul.f32 %v1377_v46, %v1589_v22 }
 0x3fe   : > { %1388 = vtanh.f32 %v909_v43  ;;  %v927_v56 = vmul.f32 %v1379_v48, %v1604_v25  ;;  %v967_v51 = vmul.f32 %v1379_v48, %v1584_v21 }
 0x3ff   : > { %1390 = vtanh.f32 %v913_v45  ;;  %v945_v61 = vsel %vm235_vm1, %v928_v50, 0.0  ;;  %v985_v62 = vsel %vm235_vm1, %v968_v52, 0.0 }
 0x400   : > { %v1381_v34 = vpop.eup %1380  ;;  %v944_v7 = vsel %vm235_vm1, %v927_v56, 0.0  ;;  %v984_v8 = vsel %vm235_vm1, %v967_v51, 0.0 }
 0x401   : > { %v1383_v53 = vpop.eup %1382  ;;  %v924_v47 = vmul.f32 %v1381_v34, %v1609_v26  ;;  %v964_v55 = vmul.f32 %v1381_v34, %v1589_v22  ;;  %v946_v43 = vadd.f32 %v945_v61, %v944_v7  ;;  %v986_v45 = vadd.f32 %v985_v62, %v984_v8 }
 0x402   : > { %v923_v59 = vmul.f32 %v1383_v53, %v1604_v25  ;;  %v963_v60 = vmul.f32 %v1383_v53, %v1584_v21 }
 0x403   : > { %v932_v0 = vsel %vm235_vm1, %v924_v47, 0.0  ;;  %v972_v1 = vsel %vm235_vm1, %v964_v55, 0.0 }
 0x404   : > { %v1385_v54 = vpop.eup %1384  ;;  %v931_v4 = vsel %vm235_vm1, %v923_v59, 0.0  ;;  %v971_v49 = vsel %vm235_vm1, %v963_v60, 0.0 }
 0x405   : > { %v1387_v2 = vpop.eup %1386  ;;  %v925_v5 = vmul.f32 %v1385_v54, %v1614_v27  ;;  %v965_v6 = vmul.f32 %v1385_v54, %v1594_v23  ;;  %v933_v41 = vadd.f32 %v932_v0, %v931_v4  ;;  %v973_v42 = vadd.f32 %v972_v1, %v971_v49 }
 0x406   : > { %v929_v11 = vmul.f32 %v1387_v2, %v1614_v27  ;;  %v969_v12 = vmul.f32 %v1387_v2, %v1594_v23 }
 0x407   : > { %v934_v35 = vsel %vm235_vm1, %v925_v5, 0.0  ;;  %v974_v38 = vsel %vm235_vm1, %v965_v6, 0.0 }
 0x408   : > { %v1389_v40 = vpop.eup %1388  ;;  %v947_v9 = vsel %vm235_vm1, %v929_v11, 0.0  ;;  %v987_v58 = vsel %vm235_vm1, %v969_v12, 0.0  ;;  %v935_v34 = vadd.f32 %v934_v35, %v933_v41  ;;  %v975_v50 = vadd.f32 %v974_v38, %v973_v42 }
 0x409   : > { %v1391_v10 = vpop.eup %1390  ;;  %v926_v46 = vmul.f32 %v1389_v40, %v1619_v28  ;;  %v966_v48 = vmul.f32 %v1389_v40, %v1599_v24  ;;  %v948_v47 = vadd.f32 %v947_v9, %v946_v43  ;;  %v988_v55 = vadd.f32 %v987_v58, %v986_v45 }
 0x40a   : > { %v930_v52 = vmul.f32 %v1391_v10, %v1619_v28  ;;  %v970_v53 = vmul.f32 %v1391_v10, %v1599_v24 }
 0x40b   : > { %v936_v56 = vsel %vm235_vm1, %v926_v46, 0.0  ;;  %v976_v51 = vsel %vm235_vm1, %v966_v48, 0.0 }
 0x40c   : > { %v937_v59 = vadd.f32 %v936_v56, %v935_v34  ;;  %v977_v60 = vadd.f32 %v976_v51, %v975_v50  ;;  %v949_v54 = vsel %vm235_vm1, %v930_v52, 0.0  ;;  %v989_v61 = vsel %vm235_vm1, %v970_v53, 0.0 }
 0x40d   : > { %v950_v62 = vadd.f32 %v949_v54, %v948_v47  ;;  %v990_v0 = vadd.f32 %v989_v61, %v988_v55  ;;  %v922_v51 = vmul.f32 %v1624_v29, %v1948_v57 }
 0x40e   : > { %v938_v1 = vrot.slane %v937_v59, 4  ;;  %v978_v2 = vrot.slane %v977_v60, 4 }
 0x40f   : > { %v951_v4 = vrot.slane %v950_v62, 4  ;;  %v991_v49 = vrot.slane %v990_v0, 4 }
 0x410   : > { %v939_v5 = vadd.f32 %v938_v1, %v937_v59  ;;  %v979_v6 = vadd.f32 %v978_v2, %v977_v60 }
 0x411   : > { %v952_v7 = vadd.f32 %v951_v4, %v950_v62  ;;  %v992_v8 = vadd.f32 %v991_v49, %v990_v0 }
 0x412   : > { %v940_v11 = vrot.slane %v939_v5, 2  ;;  %v980_v12 = vrot.slane %v979_v6, 2 }
 0x413   : > { %v953_v35 = vrot.slane %v952_v7, 2  ;;  %v993_v38 = vrot.slane %v992_v8, 2 }
 0x414   : > { %v981_v40 = vadd.f32 %v980_v12, %v979_v6  ;;  %v941_v42 = vadd.f32 %v940_v11, %v939_v5 }
 0x415   : > { %v994_v41 = vadd.f32 %v993_v38, %v992_v8  ;;  %v954_v58 = vadd.f32 %v953_v35, %v952_v7 }
 0x416   : > { %v982_v9 = vrot.slane %v981_v40, 1  ;;  %v942_v46 = vrot.slane %v941_v42, 1 }
 0x417   : > { %v995_v10 = vrot.slane %v994_v41, 1  ;;  %v955_v48 = vrot.slane %v954_v58, 1 }
 0x418   : > { %v983_v43 = vadd.f32 %v982_v9, %v981_v40  ;;  %v943_v53 = vadd.f32 %v942_v46, %v941_v42 }
 0x419   : > { %v996_v45 = vadd.f32 %v995_v10, %v994_v41  ;;  %v956_v47 = vadd.f32 %v955_v48, %v954_v58 }
 0x41a   : > { %v997_v50 = vadd.f32 %v983_v43, %v1750_v3 }
 0x41b   : > { %v998_v34 = vadd.f32 %v996_v45, %v1747_v63  ;;  %v959_v56 = vsel %vm369_vm2, %v956_v47, %v943_v53 }
 0x41c   : > { %v961_v59 = vadd.f32 %v959_v56, %v922_v51 }
 0x41d   : > { %v1001_v52 = vrot.slane %v998_v34, 7 }
 0x41e   : > { %v962_v60 = vadd.f32 %v961_v59, %v1762_v44 }
 0x41f   : > { %v1002_v55 = vsel %vm369_vm2, %v1001_v52, %v997_v50 }
 0x420   : > { %1392 = vrcp.f32 %v1002_v55 }
 0x42a   : > { %v1393_v54 = vpop.eup %1392 }
 0x42b   : > { %v2009_v61 = vmul.f32 %v1393_v54, %v962_v60 }
 0x42d   : > { %v1028_v62 = vrot.slane %v2009_v61, %v1651_v37  ;;  %v1009_v0 = vrot.slane %v2009_v61, %v1657_v39 }
 0x42f   : > { %1034 = vbcast.lane.b32.xlu1 %v1028_v62, 264  ;;  %1030 = vbcast.lane.b32.xlu0 %v1028_v62, 256 }
 0x433   : > { %1015 = vbcast.lane.b32.xlu1 %v1009_v0, 264  ;;  %1011 = vbcast.lane.b32.xlu0 %v1009_v0, 256 }
 0x437   : > { %1019 = vbcast.lane.b32.xlu1 %v1009_v0, 272  ;;  %1038 = vbcast.lane.b32.xlu0 %v1028_v62, 272 }
 0x43b   : > { %1023 = vbcast.lane.b32.xlu1 %v1009_v0, 280  ;;  %1042 = vbcast.lane.b32.xlu0 %v1028_v62, 280 }
 0x4a1   : > { %v1035_v57 = vpop.permute.xlu1 %1034  ;;  %v1031_v1 = vpop.permute.xlu0 %1030 }
 0x4a2   : > { %v1049_v2 = vsub.f32 %v1035_v57, %v1569_v18  ;;  %v1048_v4 = vsub.f32 %v1031_v1, %v1564_v17 }
 0x4a4   : > { %v1057_v49 = vmul.f32 %v1049_v2, %v1549_v14  ;;  %v1056_v5 = vmul.f32 %v1048_v4, %v1544_v13 }
 0x4a5   : > { %v1016_v6 = vpop.permute.xlu1 %1015  ;;  %v1012_v7 = vpop.permute.xlu0 %1011 }
 0x4a6   : > { %v1045_v8 = vsub.f32 %v1016_v6, %v1569_v18  ;;  %v1044_v11 = vsub.f32 %v1012_v7, %v1564_v17  ;;  %1394 = vtanh.f32 %v1057_v49 }
 0x4a7   : > { %1396 = vtanh.f32 %v1056_v5 }
 0x4a8   : > { %v1053_v12 = vmul.f32 %v1045_v8, %v1549_v14  ;;  %v1052_v35 = vmul.f32 %v1044_v11, %v1544_v13 }
 0x4a9   : > { %v1020_v38 = vpop.permute.xlu1 %1019  ;;  %v1039_v40 = vpop.permute.xlu0 %1038 }
 0x4aa   : > { %1398 = vtanh.f32 %v1053_v12  ;;  %v1046_v41 = vsub.f32 %v1020_v38, %v1574_v19  ;;  %v1050_v42 = vsub.f32 %v1039_v40, %v1574_v19 }
 0x4ab   : > { %1400 = vtanh.f32 %v1052_v35 }
 0x4ac   : > { %v1054_v9 = vmul.f32 %v1046_v41, %v1554_v15  ;;  %v1058_v58 = vmul.f32 %v1050_v42, %v1554_v15 }
 0x4ad   : > { %v1024_v10 = vpop.permute.xlu1 %1023  ;;  %v1043_v43 = vpop.permute.xlu0 %1042 }
 0x4ae   : > { %1402 = vtanh.f32 %v1054_v9  ;;  %v1047_v45 = vsub.f32 %v1024_v10, %v1579_v20  ;;  %v1051_v46 = vsub.f32 %v1043_v43, %v1579_v20 }
 0x4af   : > { %1404 = vtanh.f32 %v1058_v58 }
 0x4b0   : > { %v1055_v48 = vmul.f32 %v1047_v45, %v1559_v16  ;;  %v1059_v34 = vmul.f32 %v1051_v46, %v1559_v16  ;;  %v1395_v50 = vpop.eup %1394 }
 0x4b1   : > { %v1397_v52 = vpop.eup %1396  ;;  %v1074_v47 = vmul.f32 %v1395_v50, %v1609_v26  ;;  %v1114_v55 = vmul.f32 %v1395_v50, %v1589_v22 }
 0x4b2   : > { %1406 = vtanh.f32 %v1055_v48  ;;  %v1073_v60 = vmul.f32 %v1397_v52, %v1604_v25  ;;  %v1113_v54 = vmul.f32 %v1397_v52, %v1584_v21 }
 0x4b3   : > { %1408 = vtanh.f32 %v1059_v34  ;;  %v1091_v1 = vsel %vm235_vm1, %v1074_v47, 0.0  ;;  %v1131_v2 = vsel %vm235_vm1, %v1114_v55, 0.0 }
 0x4b4   : > { %v1399_v53 = vpop.eup %1398  ;;  %v1090_v12 = vsel %vm235_vm1, %v1073_v60, 0.0  ;;  %v1130_v35 = vsel %vm235_vm1, %v1113_v54, 0.0 }
 0x4b5   : > { %v1401_v56 = vpop.eup %1400  ;;  %v1070_v51 = vmul.f32 %v1399_v53, %v1609_v26  ;;  %v1110_v59 = vmul.f32 %v1399_v53, %v1589_v22  ;;  %v1092_v48 = vadd.f32 %v1091_v1, %v1090_v12  ;;  %v1132_v34 = vadd.f32 %v1131_v2, %v1130_v35 }
 0x4b6   : > { %v1069_v62 = vmul.f32 %v1401_v56, %v1604_v25  ;;  %v1109_v0 = vmul.f32 %v1401_v56, %v1584_v21 }
 0x4b7   : > { %v1078_v4 = vsel %vm235_vm1, %v1070_v51, 0.0  ;;  %v1118_v49 = vsel %vm235_vm1, %v1110_v59, 0.0 }
 0x4b8   : > { %v1403_v57 = vpop.eup %1402  ;;  %v1077_v6 = vsel %vm235_vm1, %v1069_v62, 0.0  ;;  %v1117_v7 = vsel %vm235_vm1, %v1109_v0, 0.0 }
 0x4b9   : > { %v1405_v5 = vpop.eup %1404  ;;  %v1071_v8 = vmul.f32 %v1403_v57, %v1614_v27  ;;  %v1111_v11 = vmul.f32 %v1403_v57, %v1594_v23  ;;  %v1079_v58 = vadd.f32 %v1078_v4, %v1077_v6  ;;  %v1119_v10 = vadd.f32 %v1118_v49, %v1117_v7 }
 0x4ba   : > { %v1075_v38 = vmul.f32 %v1405_v5, %v1614_v27  ;;  %v1115_v40 = vmul.f32 %v1405_v5, %v1594_v23 }
 0x4bb   : > { %v1080_v41 = vsel %vm235_vm1, %v1071_v8, 0.0  ;;  %v1120_v42 = vsel %vm235_vm1, %v1111_v11, 0.0 }
 0x4bc   : > { %v1407_v9 = vpop.eup %1406  ;;  %v1093_v43 = vsel %vm235_vm1, %v1075_v38, 0.0  ;;  %v1133_v45 = vsel %vm235_vm1, %v1115_v40, 0.0  ;;  %v1081_v53 = vadd.f32 %v1080_v41, %v1079_v58  ;;  %v1121_v47 = vadd.f32 %v1120_v42, %v1119_v10 }
 0x4bd   : > { %v1409_v46 = vpop.eup %1408  ;;  %v1072_v50 = vmul.f32 %v1407_v9, %v1619_v28  ;;  %v1112_v52 = vmul.f32 %v1407_v9, %v1599_v24  ;;  %v1094_v51 = vadd.f32 %v1093_v43, %v1092_v48  ;;  %v1134_v59 = vadd.f32 %v1133_v45, %v1132_v34 }
 0x4be   : > { %v1076_v55 = vmul.f32 %v1409_v46, %v1619_v28  ;;  %v1116_v56 = vmul.f32 %v1409_v46, %v1599_v24 }
 0x4bf   : > { %v1082_v60 = vsel %vm235_vm1, %v1072_v50, 0.0  ;;  %v1122_v54 = vsel %vm235_vm1, %v1112_v52, 0.0 }
 0x4c0   : > { %v1083_v62 = vadd.f32 %v1082_v60, %v1081_v53  ;;  %v1123_v0 = vadd.f32 %v1122_v54, %v1121_v47  ;;  %v1095_v57 = vsel %vm235_vm1, %v1076_v55, 0.0  ;;  %v1135_v1 = vsel %vm235_vm1, %v1116_v56, 0.0 }
 0x4c1   : > { %v1096_v2 = vadd.f32 %v1095_v57, %v1094_v51  ;;  %v1136_v4 = vadd.f32 %v1135_v1, %v1134_v59  ;;  %v1068_v54 = vmul.f32 %v1624_v29, %v2009_v61 }
 0x4c2   : > { %v1084_v49 = vrot.slane %v1083_v62, 4  ;;  %v1124_v5 = vrot.slane %v1123_v0, 4 }
 0x4c3   : > { %v1097_v6 = vrot.slane %v1096_v2, 4  ;;  %v1137_v7 = vrot.slane %v1136_v4, 4 }
 0x4c4   : > { %v1085_v8 = vadd.f32 %v1084_v49, %v1083_v62  ;;  %v1125_v11 = vadd.f32 %v1124_v5, %v1123_v0  ;;  %v1480_v62 = vmov 1966171168  }
 0x4c5   : > { %v1098_v12 = vadd.f32 %v1097_v6, %v1096_v2  ;;  %v1138_v35 = vadd.f32 %v1137_v7, %v1136_v4  ;;  %v1164_v0 = vunpack.c.l.s4 %v1480_v62 }
 0x4c6   : > { %v1086_v38 = vrot.slane %v1085_v8, 2  ;;  %v1126_v40 = vrot.slane %v1125_v11, 2 }
 0x4c7   : > { %v1099_v41 = vrot.slane %v1098_v12, 2  ;;  %v1139_v42 = vrot.slane %v1138_v35, 2  ;;  %v1165_v1 = vunpack.c.0.s8 %v1164_v0 }
 0x4c8   : > { %v1127_v9 = vadd.f32 %v1126_v40, %v1125_v11  ;;  %v1087_v10 = vadd.f32 %v1086_v38, %v1085_v8 }
 0x4c9   : > { %v1140_v58 = vadd.f32 %v1139_v42, %v1138_v35  ;;  %v1100_v45 = vadd.f32 %v1099_v41, %v1098_v12  ;;  %v1168_v4 = vsub.s32 %v1165_v1, %v1648_v36 }
 0x4ca   : > { %v1128_v43 = vrot.slane %v1127_v9, 1  ;;  %v1088_v50 = vrot.slane %v1087_v10, 1 }
 0x4cb   : > { %v1141_v46 = vrot.slane %v1140_v58, 1  ;;  %v1101_v52 = vrot.slane %v1100_v45, 1 }
 0x4cc   : > { %v1129_v48 = vadd.f32 %v1128_v43, %v1127_v9  ;;  %v1089_v56 = vadd.f32 %v1088_v50, %v1087_v10 }
 0x4cd   : > { %v1142_v34 = vadd.f32 %v1141_v46, %v1140_v58  ;;  %v1102_v51 = vadd.f32 %v1101_v52, %v1100_v45 }
 0x4ce   : > { %v1143_v47 = vadd.f32 %v1129_v48, %v1750_v3 }
 0x4cf   : > { %v1144_v53 = vadd.f32 %v1142_v34, %v1747_v63  ;;  %v1105_v60 = vsel %vm369_vm2, %v1102_v51, %v1089_v56 }
 0x4d0   : > { %v1107_v57 = vadd.f32 %v1105_v60, %v1068_v54 }
 0x4d1   : > { %v1147_v55 = vrot.slane %v1144_v53, 7 }
 0x4d2   : > { %v1108_v63 = vadd.f32 %v1107_v57, %v1762_v44 }
 0x4d3   : > { %v1148_v59 = vsel %vm369_vm2, %v1147_v55, %v1143_v47 }
 0x4d4   : > { %1410 = vrcp.f32 %v1148_v59 }
 0x4de   : > { %v1411_v2 = vpop.eup %1410 }
 0x4df   : > { %v1151_v3 = vmul.f32 %v1411_v2, %v1108_v63  }
 0x4e1   : > { %v1156_v49 = vmul.f32 %v1639_v32, %v1151_v3  ;;  %v2113_v34 = vmov %v1151_v3  ;;  %1193 = vst.msk [vmem:[#allocation7] sm:$0x3] (%p243_p0), %vm32_vm0, %v1151_v3  ;;  %1192 = vst.msk [vmem:[#allocation2] sm:$0x3] (%p243_p0), %vm32_vm0, %v1151_v3 }
 0x4e3   : > { %v1161_v5 = vadd.f32 %v1644_v33, %v1156_v49 }
 0x4e5   : > { %v1169_v6 = vrot.slane %v1161_v5, %v1168_v4  ;;  %245 = sbr.rel (!%p243_p0) target bundleno = 170 (0xaa), region = 72 }
 0x4e7   : > { %v1170_v7 = vcombine.high %v1169_v6, %v1169_v6  ;;  %v1177_v8 = vrot.slane %v1169_v6, %v1168_v4 }
 0x4e9   : > { %v1184_v61 = vrot.slane %v1170_v7, %v1168_v4  ;;  %1189 = vst.msk [vmem:[%s1187_s0] sm:$0x1] %vm1188_vm3, %v1177_v8 }
 0x4eb   : > { %1190 = vst.msk [vmem:[%s1187_s0 + $0x8] sm:$0x1] %vm1188_vm3, %v1184_v61 }
 0x4ec   :  { %1423 = shalt.err (!%p1420_p5)
}
 0x4ed   :  { %s1424_s13 = scalar_lea.hbm %s2111_s6, 256 }
 0x4ee   :  { %p1425_p6 = scmp.ne.s32.totalorder %s2111_s6, %s1424_s13  ;;  %p1428_p7 = scmp.lt.u32.totalorder %s1424_s13, %s2111_s6 }
 0x4f0   :  { %p1430_p8 = pnand %p1428_p7, %p1425_p6 }
 0x4f2   :  { %1433 = shalt.err (!%p1430_p8)
}
 0x4f3   :  { %s1482_s17 = smov 128   ;;  %s1483_s18 = smov 8  }
 0x4f4   :  { %1205 = dma.vmem_to_hbm [thread:$0]  %s1200_s9, 256, %s2111_s6, [#allocation6], %s1482_s17, %s1482_s17, %s1483_s18  }
 0x4f5   :  { %s1484_s21 = smov [#allocation7]  }
 0x4f6   :  { %s1212_s4 = sshll.u32 %s1484_s21, 4  ;;  %s1213_s4 = int_to_ptr.vmem [resolvable:$true] %s1212_s4 }
 0x4f7   :  { %s1434_s22 = scalar_lea.vmem %s1213_s4, 32  ;;  %p1439_p10 = scmp.lt.s32.totalorder %s1213_s4, %s1213_s4 }
 0x4f8   :  { %p1435_p9 = scmp.ne.s32.totalorder %s1213_s4, %s1434_s22  ;;  %p1440_p11 = scmp.lt.s32.totalorder %s1434_s22, %s1434_s22 }
 0x4fa   :  { %p1441_p12 = por %p1440_p11, %p1439_p10 }
 0x4fc   :  { %p1442_p13 = pnand %p1441_p12, %p1435_p9 }
 0x4fe   :  { %1445 = shalt.err (!%p1442_p13)
}
 0x4ff   :  { %s1446_s25 = scalar_lea.hbm %s2112_s7, 32 }
 0x500   :  { %p1447_p0 = scmp.ne.s32.totalorder %s2112_s7, %s1446_s25  ;;  %p1450_p1 = scmp.lt.u32.totalorder %s1446_s25, %s2112_s7 }
 0x502   :  { %p1452_p2 = pnand %p1450_p1, %p1447_p0 }
 0x504   :  { %1455 = shalt.err (!%p1452_p2)
}
 0x505   :  { %1215 = dma.vmem_to_hbm [thread:$0]  %s1213_s4, 32, %s2112_s7, [#allocation8]  }
 0x506   :  { %1464 = dma.done.wait [#allocation6], 256  }
 0x507   :  { %1465 = vsyncadd [#allocation6], 4294967040 }
 0x508   :  { %1466 = dma.done.wait [#allocation8], 32  }
 0x509   :  { %1467 = vsyncadd [#allocation8], 4294967264 }
 0x50a   :  { %1222 = vsyncpa [#allocation6], 1 }
 0x50b   :  { %1223 = vsyncpa [#allocation8], 1 }

</bundles_post_ra>
